<compile_context>
chip_gen: v7x
topology: tpu7x:2x2x1
jax: 0.10.0
libtpu: 0.0.40
codegen_flags: <defaults>
</compile_context>

<pallas_src>
import functools

import numpy as np
import jax
import jax.numpy as jnp
from jax.experimental import pallas as pl
from jax.experimental.pallas import tpu as pltpu

WINDOW = 11
SIGMA = 1.5
C1 = 0.01 ** 2
C2 = 0.03 ** 2


def _gaussian_1d():
    xs = np.arange(WINDOW, dtype=np.float64)
    g = np.exp(-((xs - WINDOW // 2) ** 2) / (2.0 * SIGMA ** 2))
    return (g / g.sum()).astype(np.float32)


def _banded_gauss(n):
    """(n, n) banded matrix implementing the 1D 'same' gaussian conv with zero pad.

    M[i, j] = g[j - i + 5] for |i - j| <= 5, else 0.  Symmetric (gaussian), so it
    can be applied from either side.
    """
    g = _gaussian_1d()
    half = WINDOW // 2
    m = np.zeros((n, n), np.float32)
    for i in range(n):
        for t in range(WINDOW):
            j = i + t - half
            if 0 <= j < n:
                m[i, j] = g[t]
    return m


def _mse_ssim_kernel(x_ref, y_ref, gh_ref, gv_ref, ssim_ref, sq_ref, *, nplanes):
    b = nplanes
    x = x_ref[...].astype(jnp.float32)        # (B, h, w)
    y = y_ref[...].astype(jnp.float32)
    gh = gh_ref[...]                          # (w, w) banded gaussian (columns)
    gv = gv_ref[...]                          # (h, h) banded gaussian (rows)
    h = gv.shape[0]
    w = gh.shape[0]
    q = 5 * b

    # Stack the five filter inputs and run the separable gaussian once, as two
    # batched MXU matmuls (banded matrices embed the zero padding).
    stack = jnp.concatenate([x, y, x * x, y * y, x * y], axis=0)   # (5B, h, w)
    gh_b = jnp.broadcast_to(gh, (q, w, w))
    gv_b = jnp.broadcast_to(gv, (q, h, h))
    # Horizontal pass: contract the lane (w) axis.
    sh = jnp.einsum('qrk,qkj->qrj', stack, gh_b,
                    preferred_element_type=jnp.float32)            # (5B, h, w)
    # Vertical pass: contract the row (h) axis.
    sv = jnp.einsum('qik,qkj->qij', gv_b, sh,
                    preferred_element_type=jnp.float32)            # (5B, h, w)

    mu1 = sv[0 * b:1 * b]
    mu2 = sv[1 * b:2 * b]
    e_x2 = sv[2 * b:3 * b]
    e_y2 = sv[3 * b:4 * b]
    e_xy = sv[4 * b:5 * b]

    mu1_sq = mu1 * mu1
    mu2_sq = mu2 * mu2
    mu1_mu2 = mu1 * mu2
    sigma1_sq = e_x2 - mu1_sq
    sigma2_sq = e_y2 - mu2_sq
    sigma12 = e_xy - mu1_mu2

    ssim_map = ((2.0 * mu1_mu2 + C1) * (2.0 * sigma12 + C2)) / (
        (mu1_sq + mu2_sq + C1) * (sigma1_sq + sigma2_sq + C2))

    diff = x - y
    sq_map = diff * diff

    # Scalar accumulators in SMEM, resident across the (reduction) grid axis.
    @pl.when(pl.program_id(0) == 0)
    def _():
        ssim_ref[0] = jnp.float32(0.0)
        sq_ref[0] = jnp.float32(0.0)

    ssim_ref[0] = ssim_ref[0] + jnp.sum(ssim_map)
    sq_ref[0] = sq_ref[0] + jnp.sum(sq_map)


def _pick_plane_block(p, h, w, budget_bytes=2 << 20):
    # Rough per-plane VMEM footprint: inputs + 5-stack + two filter passes + maps.
    per_plane = h * w * 4 * 24
    b = max(1, min(p, budget_bytes // max(per_plane, 1)))
    while p % b:
        b -= 1
    return int(b)


def criterion_mse_ssim(x, y, alpha=0.8):
    n, c, h, w = x.shape
    p = n * c
    xs = x.reshape(p, h, w)
    ys = y.reshape(p, h, w)
    gh = jnp.asarray(_banded_gauss(w))
    gv = jnp.asarray(_banded_gauss(h))

    b = _pick_plane_block(p, h, w)
    grid = (p // b,)

    kernel = functools.partial(_mse_ssim_kernel, nplanes=b)

    ssim_sum, sq_sum = pl.pallas_call(
        kernel,
        out_shape=(
            jax.ShapeDtypeStruct((1,), jnp.float32),
            jax.ShapeDtypeStruct((1,), jnp.float32),
        ),
        grid_spec=pltpu.PrefetchScalarGridSpec(
            num_scalar_prefetch=0,
            grid=grid,
            in_specs=[
                pl.BlockSpec((b, h, w), lambda i: (i, 0, 0)),
                pl.BlockSpec((b, h, w), lambda i: (i, 0, 0)),
                pl.BlockSpec((w, w), lambda i: (0, 0)),
                pl.BlockSpec((h, h), lambda i: (0, 0)),
            ],
            out_specs=[
                pl.BlockSpec(memory_space=pltpu.MemorySpace.SMEM),
                pl.BlockSpec(memory_space=pltpu.MemorySpace.SMEM),
            ],
        ),
        compiler_params=pltpu.CompilerParams(
            dimension_semantics=("arbitrary",)),
    )(xs, ys, gh, gv)

    num = float(n * c * h * w)
    mse = sq_sum[0] / num
    mean_ssim = ssim_sum[0] / num
    return alpha * mse + (1.0 - alpha) * (1.0 - mean_ssim)


if __name__ == "__main__":
    key = jax.random.PRNGKey(0)
    k1, k2 = jax.random.split(key)
    # batch=2, channels=3 (module default), spatial=16
    x = jax.random.uniform(k1, (2, 3, 16, 16), dtype=jnp.float32)
    y = jax.random.uniform(k2, (2, 3, 16, 16), dtype=jnp.float32)

    loss = jax.jit(criterion_mse_ssim)(x, y)
    jax.block_until_ready(loss)
    print("KERNEL_OK")
</pallas_src>

<mosaic_0001>
module attributes {stable_mosaic.version = 11 : i64} {
  func.func @_mse_ssim_kernel(%arg0: i32, %arg1: memref<6x16x16xf32, #tpu.memory_space<vmem>>, %arg2: memref<6x16x16xf32, #tpu.memory_space<vmem>>, %arg3: memref<16x16xf32, #tpu.memory_space<vmem>>, %arg4: memref<16x16xf32, #tpu.memory_space<vmem>>, %arg5: memref<1xf32, #tpu.memory_space<smem>>, %arg6: memref<1xf32, #tpu.memory_space<smem>>) attributes {dimension_semantics = [#tpu.dimension_semantics<arbitrary>], iteration_bounds = array<i64: 1>, scalar_prefetch = 0 : i64, scratch_operands = 0 : i64, tpu.core_type = #tpu.core_type<tc>, window_params = [{transform_indices = @transform_0, window_bounds = array<i64: 6, 16, 16>}, {transform_indices = @transform_1, window_bounds = array<i64: 6, 16, 16>}, {pipeline_mode = #tpu.pipeline_mode<synchronous>, transform_indices = @transform_2, window_bounds = array<i64: 16, 16>}, {pipeline_mode = #tpu.pipeline_mode<synchronous>, transform_indices = @transform_3, window_bounds = array<i64: 16, 16>}, {transform_indices = @transform_4, window_bounds = array<i64: 1>}, {transform_indices = @transform_5, window_bounds = array<i64: 1>}]} {
    %c0 = arith.constant 0 : index
    %c0_0 = arith.constant 0 : index
    %c0_1 = arith.constant 0 : index
    %0 = vector.load %arg1[%c0, %c0_0, %c0_1] : memref<6x16x16xf32, #tpu.memory_space<vmem>>, vector<6x16x16xf32>
    %c0_2 = arith.constant 0 : index
    %c0_3 = arith.constant 0 : index
    %c0_4 = arith.constant 0 : index
    %1 = vector.load %arg2[%c0_2, %c0_3, %c0_4] : memref<6x16x16xf32, #tpu.memory_space<vmem>>, vector<6x16x16xf32>
    %c0_5 = arith.constant 0 : index
    %c0_6 = arith.constant 0 : index
    %2 = vector.load %arg3[%c0_5, %c0_6] : memref<16x16xf32, #tpu.memory_space<vmem>>, vector<16x16xf32>
    %c0_7 = arith.constant 0 : index
    %c0_8 = arith.constant 0 : index
    %3 = vector.load %arg4[%c0_7, %c0_8] : memref<16x16xf32, #tpu.memory_space<vmem>>, vector<16x16xf32>
    %4 = arith.mulf %0, %0 : vector<6x16x16xf32>
    %5 = arith.mulf %1, %1 : vector<6x16x16xf32>
    %6 = arith.mulf %0, %1 : vector<6x16x16xf32>
    %7 = tpu.concatenate %0, %1, %4, %5, %6 in 0 : vector<6x16x16xf32>, vector<6x16x16xf32>, vector<6x16x16xf32>, vector<6x16x16xf32>, vector<6x16x16xf32> -> vector<30x16x16xf32>
    %8 = vector.shape_cast %2 : vector<16x16xf32> to vector<1x16x16xf32>
    %9 = vector.broadcast %8 : vector<1x16x16xf32> to vector<30x16x16xf32>
    %10 = vector.shape_cast %3 : vector<16x16xf32> to vector<1x16x16xf32>
    %11 = vector.broadcast %10 : vector<1x16x16xf32> to vector<30x16x16xf32>
    "tpu.trace_start"() <{level = 10 : i32, message = "qrk,qkj->qrj"}> : () -> ()
    %cst = arith.constant dense<0.000000e+00> : vector<30x16x16xf32>
    %12 = tpu.matmul %7, %9, %cst {dimension_numbers = #tpu.dot_dimension_numbers<[2], [1], [1], [2], [0, 0, 0, 1, 1, 2], [0], [0]>} : vector<30x16x16xf32>, vector<30x16x16xf32>, vector<30x16x16xf32> -> vector<30x16x16xf32>
    "tpu.trace_stop"() : () -> ()
    "tpu.trace_start"() <{level = 10 : i32, message = "qik,qkj->qij"}> : () -> ()
    %cst_9 = arith.constant dense<0.000000e+00> : vector<30x16x16xf32>
    %13 = tpu.matmul %11, %12, %cst_9 {dimension_numbers = #tpu.dot_dimension_numbers<[2], [1], [1], [2], [0, 0, 0, 1, 1, 2], [0], [0]>} : vector<30x16x16xf32>, vector<30x16x16xf32>, vector<30x16x16xf32> -> vector<30x16x16xf32>
    "tpu.trace_stop"() : () -> ()
    %14 = vector.extract_strided_slice %13 {offsets = [0, 0, 0], sizes = [6, 16, 16], strides = [1, 1, 1]} : vector<30x16x16xf32> to vector<6x16x16xf32>
    %15 = vector.extract_strided_slice %13 {offsets = [6, 0, 0], sizes = [6, 16, 16], strides = [1, 1, 1]} : vector<30x16x16xf32> to vector<6x16x16xf32>
    %16 = vector.extract_strided_slice %13 {offsets = [12, 0, 0], sizes = [6, 16, 16], strides = [1, 1, 1]} : vector<30x16x16xf32> to vector<6x16x16xf32>
    %17 = vector.extract_strided_slice %13 {offsets = [18, 0, 0], sizes = [6, 16, 16], strides = [1, 1, 1]} : vector<30x16x16xf32> to vector<6x16x16xf32>
    %18 = vector.extract_strided_slice %13 {offsets = [24, 0, 0], sizes = [6, 16, 16], strides = [1, 1, 1]} : vector<30x16x16xf32> to vector<6x16x16xf32>
    %19 = arith.mulf %14, %14 : vector<6x16x16xf32>
    %20 = arith.mulf %15, %15 : vector<6x16x16xf32>
    %21 = arith.mulf %14, %15 : vector<6x16x16xf32>
    %22 = arith.subf %16, %19 : vector<6x16x16xf32>
    %23 = arith.subf %17, %20 : vector<6x16x16xf32>
    %24 = arith.subf %18, %21 : vector<6x16x16xf32>
    %cst_10 = arith.constant 2.000000e+00 : f32
    %25 = vector.broadcast %cst_10 : f32 to vector<6x16x16xf32>
    %26 = arith.mulf %25, %21 : vector<6x16x16xf32>
    %cst_11 = arith.constant 9.99999974E-5 : f32
    %27 = vector.broadcast %cst_11 : f32 to vector<6x16x16xf32>
    %28 = arith.addf %26, %27 : vector<6x16x16xf32>
    %cst_12 = arith.constant 2.000000e+00 : f32
    %29 = vector.broadcast %cst_12 : f32 to vector<6x16x16xf32>
    %30 = arith.mulf %29, %24 : vector<6x16x16xf32>
    %cst_13 = arith.constant 8.99999984E-4 : f32
    %31 = vector.broadcast %cst_13 : f32 to vector<6x16x16xf32>
    %32 = arith.addf %30, %31 : vector<6x16x16xf32>
    %33 = arith.mulf %28, %32 : vector<6x16x16xf32>
    %34 = arith.addf %19, %20 : vector<6x16x16xf32>
    %cst_14 = arith.constant 9.99999974E-5 : f32
    %35 = vector.broadcast %cst_14 : f32 to vector<6x16x16xf32>
    %36 = arith.addf %34, %35 : vector<6x16x16xf32>
    %37 = arith.addf %22, %23 : vector<6x16x16xf32>
    %cst_15 = arith.constant 8.99999984E-4 : f32
    %38 = vector.broadcast %cst_15 : f32 to vector<6x16x16xf32>
    %39 = arith.addf %37, %38 : vector<6x16x16xf32>
    %40 = arith.mulf %36, %39 : vector<6x16x16xf32>
    %41 = arith.divf %33, %40 : vector<6x16x16xf32>
    %42 = arith.subf %0, %1 : vector<6x16x16xf32>
    %43 = arith.mulf %42, %42 : vector<6x16x16xf32>
    %c0_i32 = arith.constant 0 : i32
    %44 = arith.cmpi eq, %arg0, %c0_i32 : i32
    %45 = arith.extui %44 : i1 to i32
    %c0_i32_16 = arith.constant 0 : i32
    %46 = arith.cmpi ne, %45, %c0_i32_16 : i32
    scf.if %46 {
      %cst_23 = arith.constant 0.000000e+00 : f32
      %c0_24 = arith.constant 0 : index
      %61 = memref.load %arg5[%c0_24] : memref<1xf32, #tpu.memory_space<smem>>
      memref.store %cst_23, %arg5[%c0_24] : memref<1xf32, #tpu.memory_space<smem>>
      %cst_25 = arith.constant 0.000000e+00 : f32
      %c0_26 = arith.constant 0 : index
      %62 = memref.load %arg6[%c0_26] : memref<1xf32, #tpu.memory_space<smem>>
      memref.store %cst_25, %arg6[%c0_26] : memref<1xf32, #tpu.memory_space<smem>>
    } else {
    }
    %c0_17 = arith.constant 0 : index
    %47 = memref.load %arg5[%c0_17] : memref<1xf32, #tpu.memory_space<smem>>
    %48 = vector.shape_cast %41 : vector<6x16x16xf32> to vector<1x6x16x16xf32>
    %cst_18 = arith.constant dense<0.000000e+00> : vector<1xf32>
    %49 = vector.multi_reduction <add>, %48, %cst_18 [1, 2, 3] : vector<1x6x16x16xf32> to vector<1xf32>
    %50 = vector.shape_cast %49 : vector<1xf32> to vector<1x1x1x1xf32>
    %51 = vector.extract %50[0, 0, 0, 0] : f32 from vector<1x1x1x1xf32>
    %52 = arith.addf %47, %51 : f32
    %c0_19 = arith.constant 0 : index
    %53 = memref.load %arg5[%c0_19] : memref<1xf32, #tpu.memory_space<smem>>
    memref.store %52, %arg5[%c0_19] : memref<1xf32, #tpu.memory_space<smem>>
    %c0_20 = arith.constant 0 : index
    %54 = memref.load %arg6[%c0_20] : memref<1xf32, #tpu.memory_space<smem>>
    %55 = vector.shape_cast %43 : vector<6x16x16xf32> to vector<1x6x16x16xf32>
    %cst_21 = arith.constant dense<0.000000e+00> : vector<1xf32>
    %56 = vector.multi_reduction <add>, %55, %cst_21 [1, 2, 3] : vector<1x6x16x16xf32> to vector<1xf32>
    %57 = vector.shape_cast %56 : vector<1xf32> to vector<1x1x1x1xf32>
    %58 = vector.extract %57[0, 0, 0, 0] : f32 from vector<1x1x1x1xf32>
    %59 = arith.addf %54, %58 : f32
    %c0_22 = arith.constant 0 : index
    %60 = memref.load %arg6[%c0_22] : memref<1xf32, #tpu.memory_space<smem>>
    memref.store %59, %arg6[%c0_22] : memref<1xf32, #tpu.memory_space<smem>>
    return
  }
  func.func @transform_0(%arg0: i32) -> (i32, i32, i32) {
    %c0_i32 = arith.constant 0 : i32
    %c0_i32_0 = arith.constant 0 : i32
    %c0_i32_1 = arith.constant 0 : i32
    return %arg0, %c0_i32, %c0_i32_0 : i32, i32, i32
  }
  func.func @transform_1(%arg0: i32) -> (i32, i32, i32) {
    %c0_i32 = arith.constant 0 : i32
    %c0_i32_0 = arith.constant 0 : i32
    %c0_i32_1 = arith.constant 0 : i32
    return %arg0, %c0_i32, %c0_i32_0 : i32, i32, i32
  }
  func.func @transform_2(%arg0: i32) -> (i32, i32) {
    %c0_i32 = arith.constant 0 : i32
    %c0_i32_0 = arith.constant 0 : i32
    %c0_i32_1 = arith.constant 0 : i32
    return %c0_i32, %c0_i32_0 : i32, i32
  }
  func.func @transform_3(%arg0: i32) -> (i32, i32) {
    %c0_i32 = arith.constant 0 : i32
    %c0_i32_0 = arith.constant 0 : i32
    %c0_i32_1 = arith.constant 0 : i32
    return %c0_i32, %c0_i32_0 : i32, i32
  }
  func.func @transform_4(%arg0: i32) -> i32 {
    %c0_i32 = arith.constant 0 : i32
    %c0_i32_0 = arith.constant 0 : i32
    return %c0_i32 : i32
  }
  func.func @transform_5(%arg0: i32) -> i32 {
    %c0_i32 = arith.constant 0 : i32
    %c0_i32_0 = arith.constant 0 : i32
    return %c0_i32 : i32
  }
}

</mosaic_0001>

<bundles_post_ra>
// kernel: criterion_mse_ssim.1
= control target key start
LH: loop header
LB: loop body
LE: loop exit
PB: predicated region body
PF: predicated region fallthrough
CT: control target
= control target key end

     0   :  { %11 = vsyncpa [#allocation3], 0  ;;  %s7103_s0 = inlined_call_operand.hbm [shape: f32[6,16,16], index: 0, kind: input, shape index: {}]   ;;  %s7104_s1 = inlined_call_operand.hbm [shape: f32[6,16,16], index: 1, kind: input, shape index: {}]   ;;  %s7105_s2 = inlined_call_operand.vmem [shape: f32[16,16], index: 2, kind: input, shape index: {}, may-alias: {2,3}]   ;;  %s7106_s3 = inlined_call_operand.vmem [shape: f32[16,16], index: 3, kind: input, shape index: {}, may-alias: {2,3}]   ;;  %s7107_s4 = inlined_call_operand.hbm [shape: f32[1], index: 4, kind: output, shape index: {0}]   ;;  %s7108_s5 = inlined_call_operand.hbm [shape: f32[1], index: 5, kind: output, shape index: {1}]  }
   0x1   :  { %12 = vsyncpa [#allocation6], 0 }
   0x2   :  { %13 = vsyncpa [#allocation4], 0 }
   0x3   :  { %14 = vsyncpa [#allocation9], 0  ;;  %s6276_s18 = smov [#allocation2]   ;;  %s6204_s22 = scalar_lea.hbm %s7103_s0, 1536 }
   0x4   :  { %s20_s19 = sshll.u32 %s6276_s18, 4  ;;  %p6205_p0 = scmp.ne.s32.totalorder %s7103_s0, %s6204_s22  ;;  %s21_s19 = int_to_ptr.vmem [resolvable:$true] %s20_s19 }
   0x5   :  { %p6208_p1 = scmp.lt.u32.totalorder %s6204_s22, %s7103_s0 }
   0x7   :  { %p6210_p2 = pnand %p6208_p1, %p6205_p0 }
   0x9   :  { %6213 = shalt.err (!%p6210_p2)
}
   0xa   :  { %s6214_s27 = scalar_lea.vmem %s21_s19, 1536  ;;  %p6219_p4 = scmp.lt.s32.totalorder %s21_s19, %s21_s19 }
   0xb   :  { %p6215_p3 = scmp.ne.s32.totalorder %s21_s19, %s6214_s27  ;;  %p6220_p5 = scmp.lt.s32.totalorder %s6214_s27, %s6214_s27 }
   0xd   :  { %p6221_p6 = por %p6220_p5, %p6219_p4 }
   0xf   :  { %p6222_p7 = pnand %p6221_p6, %p6215_p3 }
  0x11   :  { %6225 = shalt.err (!%p6222_p7)
}
  0x12   :  { %s6277_s28 = smov 128   ;;  %s6278_s29 = smov 8  }
  0x13   :  { %26 = dma.hbm_to_vmem [thread:$0]  %s7103_s0, 1536, %s21_s19, [#allocation3], %s6277_s28, %s6277_s28, %s6278_s29  }
  0x14   :  { %s6279_s7 = smov [#allocation5]   ;;  %s6226_s11 = scalar_lea.hbm %s7104_s1, 1536 }
  0x15   :  { %s32_s8 = sshll.u32 %s6279_s7, 4  ;;  %p6227_p8 = scmp.ne.s32.totalorder %s7104_s1, %s6226_s11  ;;  %s33_s8 = int_to_ptr.vmem [resolvable:$true] %s32_s8 }
  0x16   :  { %p6230_p9 = scmp.lt.u32.totalorder %s6226_s11, %s7104_s1 }
  0x18   :  { %p6232_p10 = pnand %p6230_p9, %p6227_p8 }
  0x1a   :  { %6235 = shalt.err (!%p6232_p10)
}
  0x1b   :  { %s6236_s16 = scalar_lea.vmem %s33_s8, 1536  ;;  %p6241_p12 = scmp.lt.s32.totalorder %s33_s8, %s33_s8 }
  0x1c   :  { %p6237_p11 = scmp.ne.s32.totalorder %s33_s8, %s6236_s16  ;;  %p6242_p13 = scmp.lt.s32.totalorder %s6236_s16, %s6236_s16 }
  0x1e   :  { %p6243_p0 = por %p6242_p13, %p6241_p12 }
  0x20   :  { %p6244_p1 = pnand %p6243_p0, %p6237_p11 }
  0x22   :  { %6247 = shalt.err (!%p6244_p1)
}
  0x23   :  { %38 = dma.hbm_to_vmem [thread:$0]  %s7104_s1, 1536, %s33_s8, [#allocation6], %s6277_s28, %s6277_s28, %s6278_s29  }
  0x24   :  { %6268 = dma.done.wait [#allocation3], 1536  }
  0x25   :  { %6269 = vsyncadd [#allocation3], 4294965760 }
  0x26   :  { %6270 = dma.done.wait [#allocation6], 1536  }
  0x27   :  { %6271 = vsyncadd [#allocation6], 4294965760  ;;  %vm113_vm0 = vcmask 130048   ;;  %v73_v0 = vld [vmem:[%s7105_s2] sm:$0xff]  ;;  %v74_v1 = vld [vmem:[%s7105_s2 + $0x8] sm:$0xff]  ;;  %s6248_s27 = scalar_lea.hbm %s7107_s4, 16 }
  0x28   :  { %v6342_v2 = vld [vmem:[#allocation2] sm:$0xff]  ;;  %v6344_v3 = vpack.c.bf16 %v74_v1, %v73_v0  ;;  %v6348_v4 = vld [vmem:[#allocation2 + $0x10] sm:$0xff]  ;;  %v6356_v5 = vld [vmem:[#allocation2 + $0x8] sm:$0xff]  ;;  %p6249_p2 = scmp.ne.s32.totalorder %s7107_s4, %s6248_s27  ;;  %p6252_p3 = scmp.lt.u32.totalorder %s6248_s27, %s7107_s4 }
  0x29   :  { %5511 = vmatprep.mubr.msk.f32.mxu0 %vm113_vm0, %v6342_v2  ;;  %5518 = vmatprep.mubr.msk.f32.mxu1 %vm113_vm0, %v6348_v4  ;;  %v6358_v6 = vld [vmem:[#allocation2 + $0x18] sm:$0xff]  ;;  %v6360_v7 = vld [vmem:[#allocation5] sm:$0xff]  ;;  %v6366_v9 = vld [vmem:[#allocation5 + $0x10] sm:$0xff]  ;;  %v77_v53 = vmul.f32 %v6342_v2, %v6342_v2  ;;  %v79_v54 = vmul.f32 %v6348_v4, %v6348_v4  ;;  %v78_v55 = vmul.f32 %v6356_v5, %v6356_v5 }
  0x2a   :  { %5928 = vmatprep.subr.bf16.mxu0 %v6344_v3  ;;  %5932 = vmatprep.subr.bf16.mxu1 %v6344_v3  ;;  %v5016_v8 = vsub.f32 %v6342_v2, %v6360_v7  ;;  %v6368_v10 = vld [vmem:[#allocation5 + $0x8] sm:$0xff]  ;;  %v6370_v11 = vld [vmem:[#allocation2 + $0x20] sm:$0xff]  ;;  %v6372_v12 = vld [vmem:[#allocation2 + $0x30] sm:$0xff]  ;;  %v5018_v13 = vsub.f32 %v6348_v4, %v6366_v9  ;;  %v80_v56 = vmul.f32 %v6358_v6, %v6358_v6  ;;  %p6254_p4 = pnand %p6252_p3, %p6249_p2 }
  0x2b   :  { %5930 = vmatpush3.bf16.msra.mxu0 %v6344_v3  ;;  %5934 = vmatpush3.bf16.msra.mxu1 %v6344_v3  ;;  %v5017_v14 = vsub.f32 %v6356_v5, %v6368_v10  ;;  %v6382_v15 = vld [vmem:[#allocation2 + $0x28] sm:$0xff]  ;;  %v6384_v17 = vld [vmem:[#allocation5 + $0x18] sm:$0xff]  ;;  %v6392_v22 = vld [vmem:[#allocation5 + $0x20] sm:$0xff]  ;;  %v81_v57 = vmul.f32 %v6370_v11, %v6370_v11  ;;  %v83_v58 = vmul.f32 %v6372_v12, %v6372_v12 }
  0x2c   :  { %5936 = vmatprep.subr.bf16.mxu0 %v6344_v3  ;;  %5940 = vmatprep.subr.bf16.mxu1 %v6344_v3  ;;  %v5028_v16 = vmul.f32 %v5016_v8, %v5016_v8  ;;  %v6388_v18 = vld [vmem:[#allocation2 + $0x38] sm:$0xff]  ;;  %v5030_v19 = vmul.f32 %v5018_v13, %v5018_v13  ;;  %v5019_v21 = vsub.f32 %v6358_v6, %v6384_v17  ;;  %v6394_v23 = vld [vmem:[#allocation5 + $0x30] sm:$0xff]  ;;  %v6409_v27 = vld [vmem:[#allocation2 + $0x40] sm:$0xff] }
  0x2d   :  { %v5029_v20 = vmul.f32 %v5017_v14, %v5017_v14  ;;  %v5020_v25 = vsub.f32 %v6370_v11, %v6392_v22  ;;  %v6405_v26 = vsub.f32 %v6372_v12, %v6394_v23  ;;  %v6411_v28 = vld [vmem:[#allocation2 + $0x50] sm:$0xff]  ;;  %v6419_v34 = vld [vmem:[#allocation5 + $0x28] sm:$0xff]  ;;  %v6425_v36 = vld [vmem:[#allocation2 + $0x58] sm:$0xff]  ;;  %v82_v59 = vmul.f32 %v6382_v15, %v6382_v15 }
  0x2e   :  { %5512 = vmatmul.mubr.msk.f32.vlgmr.msra.gmra.mrb[0].mxu0 %vm113_vm0, %v6356_v5  ;;  %5519 = vmatmul.mubr.msk.f32.vlgmr.msra.gmra.mrb[0].mxu1 %vm113_vm0, %v6358_v6  ;;  %v5085_v24 = vsel %vm113_vm0, %v5028_v16, 0.0  ;;  %v5088_v29 = vsel %vm113_vm0, %v5030_v19, 0.0  ;;  %v5031_v31 = vmul.f32 %v5019_v21, %v5019_v21  ;;  %v6423_v35 = vld [vmem:[#allocation2 + $0x48] sm:$0xff]  ;;  %v5021_v38 = vsub.f32 %v6382_v15, %v6419_v34  ;;  %v6430_v39 = vld [vmem:[#allocation5 + $0x38] sm:$0xff]  ;;  %v6440_v42 = vld [vmem:[#allocation5 + $0x40] sm:$0xff] }
  0x2f   :  { %5938 = vmatpush3.bf16.msra.mxu0 %v6344_v3  ;;  %5942 = vmatpush3.bf16.msra.mxu1 %v6344_v3  ;;  %v5086_v30 = vsel %vm113_vm0, %v5029_v20, 0.0  ;;  %v5032_v33 = vmul.f32 %v5020_v25, %v5020_v25  ;;  %v6438_v41 = vsub.f32 %v6388_v18, %v6430_v39  ;;  %v6447_v45 = vsub.f32 %v6409_v27, %v6440_v42  ;;  %v6476_v50 = vld [vmem:[#allocation5 + $0x50] sm:$0xff]  ;;  %v6484_v51 = vld [vmem:[#allocation5 + $0x48] sm:$0xff]  ;;  %v6486_v52 = vld [vmem:[#allocation5 + $0x58] sm:$0xff] }
  0x30   :  { %5525 = vmatprep.mubr.msk.f32.mxu0 %vm113_vm0, %v6370_v11  ;;  %5532 = vmatprep.mubr.msk.f32.mxu1 %vm113_vm0, %v6372_v12  ;;  %v5087_v32 = vadd.f32 %v5086_v30, %v5085_v24  ;;  %v5090_v37 = vsel %vm113_vm0, %v5031_v31, 0.0  ;;  %v5033_v44 = vmul.f32 %v5021_v38, %v5021_v38  ;;  %v84_v60 = vmul.f32 %v6388_v18, %v6388_v18 }
  0x31   :  { %5944 = vmatprep.subr.bf16.mxu0 %v6344_v3  ;;  %5948 = vmatprep.subr.bf16.mxu1 %v6344_v3  ;;  %v5092_v43 = vsel %vm113_vm0, %v5032_v33, 0.0  ;;  %v85_v61 = vmul.f32 %v6409_v27, %v6409_v27  ;;  %v87_v62 = vmul.f32 %v6411_v28, %v6411_v28  ;;  %v86_v63 = vmul.f32 %v6423_v35, %v6423_v35 }
  0x32   :  { %5526 = vmatmul.mubr.msk.f32.vlgmr.msra.gmra.mrb[2].mxu0 %vm113_vm0, %v6382_v15  ;;  %5533 = vmatmul.mubr.msk.f32.vlgmr.msra.gmra.mrb[2].mxu1 %vm113_vm0, %v6388_v18  ;;  %v5089_v40 = vadd.f32 %v5088_v29, %v5087_v32  ;;  %v5094_v47 = vsel %vm113_vm0, %v5033_v44, 0.0  ;;  %v88_v0 = vmul.f32 %v6425_v36, %v6425_v36  ;;  %v89_v1 = vmul.f32 %v6360_v7, %v6360_v7 }
  0x33   :  { %5946 = vmatpush3.bf16.msra.mxu0 %v6344_v3  ;;  %5950 = vmatpush3.bf16.msra.mxu1 %v6344_v3  ;;  %v91_v8 = vmul.f32 %v6366_v9, %v6366_v9  ;;  %v90_v13 = vmul.f32 %v6368_v10, %v6368_v10  ;;  %v92_v14 = vmul.f32 %v6384_v17, %v6384_v17 }
  0x34   :  { %5539 = vmatprep.mubr.msk.f32.mxu0 %vm113_vm0, %v6409_v27  ;;  %5546 = vmatprep.mubr.msk.f32.mxu1 %vm113_vm0, %v6411_v28  ;;  %v5091_v46 = vadd.f32 %v5090_v37, %v5089_v40  ;;  %v93_v16 = vmul.f32 %v6392_v22, %v6392_v22  ;;  %v95_v19 = vmul.f32 %v6394_v23, %v6394_v23 }
  0x35   :  { %5952 = vmatprep.subr.bf16.mxu0 %v6344_v3  ;;  %5956 = vmatprep.subr.bf16.mxu1 %v6344_v3  ;;  %v94_v20 = vmul.f32 %v6419_v34, %v6419_v34  ;;  %v96_v21 = vmul.f32 %v6430_v39, %v6430_v39  ;;  %v97_v24 = vmul.f32 %v6440_v42, %v6440_v42 }
  0x36   :  { %5540 = vmatmul.mubr.msk.f32.vlgmr.msra.gmra.mrb[4].mxu0 %vm113_vm0, %v6423_v35  ;;  %5547 = vmatmul.mubr.msk.f32.vlgmr.msra.gmra.mrb[4].mxu1 %vm113_vm0, %v6425_v36  ;;  %v5093_v48 = vadd.f32 %v5092_v43, %v5091_v46  ;;  %v99_v25 = vmul.f32 %v6476_v50, %v6476_v50  ;;  %v98_v29 = vmul.f32 %v6484_v51, %v6484_v51 }
  0x37   :  { %5954 = vmatpush3.bf16.msra.mxu0 %v6344_v3  ;;  %5958 = vmatpush3.bf16.msra.mxu1 %v6344_v3  ;;  %v100_v30 = vmul.f32 %v6486_v52, %v6486_v52  ;;  %v101_v31 = vmul.f32 %v6360_v7, %v6342_v2  ;;  %v103_v32 = vmul.f32 %v6366_v9, %v6348_v4 }
  0x38   :  { %5553 = vmatprep.mubr.msk.f32.mxu0 %vm113_vm0, %v6360_v7  ;;  %5560 = vmatprep.mubr.msk.f32.mxu1 %vm113_vm0, %v6366_v9  ;;  %v6466_v49 = vadd.f32 %v5094_v47, %v5093_v48  ;;  %v102_v33 = vmul.f32 %v6368_v10, %v6356_v5  ;;  %v104_v37 = vmul.f32 %v6384_v17, %v6358_v6 }
  0x39   :  { %5960 = vmatprep.subr.bf16.mxu0 %v6344_v3  ;;  %5964 = vmatprep.subr.bf16.mxu1 %v6344_v3  ;;  %v105_v2 = vmul.f32 %v6392_v22, %v6370_v11  ;;  %v107_v4 = vmul.f32 %v6394_v23, %v6372_v12  ;;  %v106_v5 = vmul.f32 %v6419_v34, %v6382_v15  ;;  %v6643_v12 = vld [vmem:[%s7106_s3] sm:$0xff] }
  0x3a   :  { %5554 = vmatmul.mubr.msk.f32.vlgmr.msra.gmra.mrb[6].mxu0 %vm113_vm0, %v6368_v10  ;;  %5561 = vmatmul.mubr.msk.f32.vlgmr.msra.gmra.mrb[6].mxu1 %vm113_vm0, %v6384_v17  ;;  %v108_v6 = vmul.f32 %v6430_v39, %v6388_v18  ;;  %v109_v7 = vmul.f32 %v6440_v42, %v6409_v27  ;;  %v111_v9 = vmul.f32 %v6476_v50, %v6411_v28 }
  0x3b   :  { %5962 = vmatpush3.bf16.msra.mxu0 %v6344_v3  ;;  %5966 = vmatpush3.bf16.msra.mxu1 %v6344_v3  ;;  %v110_v10 = vmul.f32 %v6484_v51, %v6423_v35  ;;  %v112_v11 = vmul.f32 %v6486_v52, %v6425_v36 }
  0x3c   :  { %5567 = vmatprep.mubr.msk.f32.mxu0 %vm113_vm0, %v6392_v22  ;;  %5574 = vmatprep.mubr.msk.f32.mxu1 %vm113_vm0, %v6394_v23 }
  0x3d   :  { %5968 = vmatprep.subr.bf16.mxu0 %v6344_v3  ;;  %5972 = vmatprep.subr.bf16.mxu1 %v6344_v3 }
  0x3e   :  { %5568 = vmatmul.mubr.msk.f32.vlgmr.msra.gmra.mrb[8].mxu0 %vm113_vm0, %v6419_v34  ;;  %5575 = vmatmul.mubr.msk.f32.vlgmr.msra.gmra.mrb[8].mxu1 %vm113_vm0, %v6430_v39  ;;  %v6652_v39 = vld [vmem:[%s7106_s3 + $0x8] sm:$0xff] }
  0x3f   :  { %5970 = vmatpush3.bf16.msra.mxu0 %v6344_v3  ;;  %5974 = vmatpush3.bf16.msra.mxu1 %v6344_v3 }
  0x40   :  { %5581 = vmatprep.mubr.msk.f32.mxu0 %vm113_vm0, %v6440_v42  ;;  %5588 = vmatprep.mubr.msk.f32.mxu1 %vm113_vm0, %v6476_v50 }
  0x41   :  { %5976 = vmatprep.subr.bf16.mxu0 %v6344_v3  ;;  %5980 = vmatprep.subr.bf16.mxu1 %v6344_v3 }
  0x42   :  { %5582 = vmatmul.mubr.msk.f32.vlgmr.msra.gmra.mrb[10].mxu0 %vm113_vm0, %v6484_v51  ;;  %5589 = vmatmul.mubr.msk.f32.vlgmr.msra.gmra.mrb[10].mxu1 %vm113_vm0, %v6486_v52 }
  0x43   :  { %5978 = vmatpush3.bf16.msra.mxu0 %v6344_v3  ;;  %5982 = vmatpush3.bf16.msra.mxu1 %v6344_v3 }
  0x44   :  { %5595 = vmatprep.mubr.msk.f32.mxu0 %vm113_vm0, %v77_v53  ;;  %5602 = vmatprep.mubr.msk.f32.mxu1 %vm113_vm0, %v79_v54 }
  0x45   :  { %5984 = vmatprep.subr.bf16.mxu0 %v6344_v3  ;;  %5988 = vmatprep.subr.bf16.mxu1 %v6344_v3 }
  0x46   :  { %5596 = vmatmul.mubr.msk.f32.vlgmr.msra.gmra.mrb[12].mxu0 %vm113_vm0, %v78_v55  ;;  %5603 = vmatmul.mubr.msk.f32.vlgmr.msra.gmra.mrb[12].mxu1 %vm113_vm0, %v80_v56 }
  0x47   :  { %5986 = vmatpush3.bf16.msra.mxu0 %v6344_v3  ;;  %5990 = vmatpush3.bf16.msra.mxu1 %v6344_v3 }
  0x48   :  { %5609 = vmatprep.mubr.msk.f32.mxu0 %vm113_vm0, %v81_v57  ;;  %5616 = vmatprep.mubr.msk.f32.mxu1 %vm113_vm0, %v83_v58 }
  0x49   :  { %5992 = vmatprep.subr.bf16.mxu0 %v6344_v3  ;;  %5996 = vmatprep.subr.bf16.mxu1 %v6344_v3 }
  0x4a   :  { %5610 = vmatmul.mubr.msk.f32.vlgmr.msra.gmra.mrb[14].mxu0 %vm113_vm0, %v82_v59  ;;  %5617 = vmatmul.mubr.msk.f32.vlgmr.msra.gmra.mrb[14].mxu1 %vm113_vm0, %v84_v60 }
  0x4b   :  { %5994 = vmatpush3.bf16.msra.mxu0 %v6344_v3  ;;  %5998 = vmatpush3.bf16.msra.mxu1 %v6344_v3 }
  0x4c   :  { %5623 = vmatprep.mubr.msk.f32.mxu0 %vm113_vm0, %v85_v61  ;;  %5630 = vmatprep.mubr.msk.f32.mxu1 %vm113_vm0, %v87_v62 }
  0x4d   :  { %6000 = vmatprep.subr.bf16.mxu0 %v6344_v3  ;;  %6004 = vmatprep.subr.bf16.mxu1 %v6344_v3 }
  0x4e   :  { %5624 = vmatmul.mubr.msk.f32.vlgmr.msra.gmra.mrb[16].mxu0 %vm113_vm0, %v86_v63  ;;  %5631 = vmatmul.mubr.msk.f32.vlgmr.msra.gmra.mrb[16].mxu1 %vm113_vm0, %v88_v0 }
  0x4f   :  { %6002 = vmatpush3.bf16.msra.mxu0 %v6344_v3  ;;  %6006 = vmatpush3.bf16.msra.mxu1 %v6344_v3 }
  0x50   :  { %5637 = vmatprep.mubr.msk.f32.mxu0 %vm113_vm0, %v89_v1  ;;  %5644 = vmatprep.mubr.msk.f32.mxu1 %vm113_vm0, %v91_v8 }
  0x51   :  { %6008 = vmatprep.subr.bf16.mxu0 %v6344_v3  ;;  %6012 = vmatprep.subr.bf16.mxu1 %v6344_v3 }
  0x52   :  { %5638 = vmatmul.mubr.msk.f32.vlgmr.msra.gmra.mrb[18].mxu0 %vm113_vm0, %v90_v13  ;;  %5645 = vmatmul.mubr.msk.f32.vlgmr.msra.gmra.mrb[18].mxu1 %vm113_vm0, %v92_v14 }
  0x53   :  { %6010 = vmatpush3.bf16.msra.mxu0 %v6344_v3  ;;  %6014 = vmatpush3.bf16.msra.mxu1 %v6344_v3 }
  0x54   :  { %5651 = vmatprep.mubr.msk.f32.mxu0 %vm113_vm0, %v93_v16  ;;  %5658 = vmatprep.mubr.msk.f32.mxu1 %vm113_vm0, %v95_v19 }
  0x55   :  { %6016 = vmatprep.subr.bf16.mxu0 %v6344_v3  ;;  %6020 = vmatprep.subr.bf16.mxu1 %v6344_v3 }
  0x56   :  { %5652 = vmatmul.mubr.msk.f32.vlgmr.msra.gmra.mrb[20].mxu0 %vm113_vm0, %v94_v20  ;;  %5659 = vmatmul.mubr.msk.f32.vlgmr.msra.gmra.mrb[20].mxu1 %vm113_vm0, %v96_v21 }
  0x57   :  { %6018 = vmatpush3.bf16.msra.mxu0 %v6344_v3  ;;  %6022 = vmatpush3.bf16.msra.mxu1 %v6344_v3 }
  0x58   :  { %5665 = vmatprep.mubr.msk.f32.mxu0 %vm113_vm0, %v97_v24  ;;  %5672 = vmatprep.mubr.msk.f32.mxu1 %vm113_vm0, %v99_v25 }
  0x59   :  { %6024 = vmatprep.subr.bf16.mxu0 %v6344_v3  ;;  %6028 = vmatprep.subr.bf16.mxu1 %v6344_v3 }
  0x5a   :  { %5666 = vmatmul.mubr.msk.f32.vlgmr.msra.gmra.mrb[22].mxu0 %vm113_vm0, %v98_v29  ;;  %5673 = vmatmul.mubr.msk.f32.vlgmr.msra.gmra.mrb[22].mxu1 %vm113_vm0, %v100_v30 }
  0x5b   :  { %6026 = vmatpush3.bf16.msra.mxu0 %v6344_v3  ;;  %6030 = vmatpush3.bf16.msra.mxu1 %v6344_v3 }
  0x5c   :  { %5679 = vmatprep.mubr.msk.f32.mxu0 %vm113_vm0, %v101_v31  ;;  %5686 = vmatprep.mubr.msk.f32.mxu1 %vm113_vm0, %v103_v32 }
  0x5d   :  { %6032 = vmatprep.subr.bf16.mxu0 %v6344_v3  ;;  %6036 = vmatprep.subr.bf16.mxu1 %v6344_v3 }
  0x5e   :  { %5680 = vmatmul.mubr.msk.f32.vlgmr.msra.gmra.mrb[24].mxu0 %vm113_vm0, %v102_v33  ;;  %5687 = vmatmul.mubr.msk.f32.vlgmr.msra.gmra.mrb[24].mxu1 %vm113_vm0, %v104_v37 }
  0x5f   :  { %6034 = vmatpush3.bf16.msra.mxu0 %v6344_v3  ;;  %6038 = vmatpush3.bf16.msra.mxu1 %v6344_v3 }
  0x60   :  { %5693 = vmatprep.mubr.msk.f32.mxu0 %vm113_vm0, %v105_v2  ;;  %5700 = vmatprep.mubr.msk.f32.mxu1 %vm113_vm0, %v107_v4 }
  0x61   :  { %6040 = vmatprep.subr.bf16.mxu0 %v6344_v3  ;;  %6044 = vmatprep.subr.bf16.mxu1 %v6344_v3 }
  0x62   :  { %5694 = vmatmul.mubr.msk.f32.vlgmr.msra.gmra.mrb[26].mxu0 %vm113_vm0, %v106_v5  ;;  %5701 = vmatmul.mubr.msk.f32.vlgmr.msra.gmra.mrb[26].mxu1 %vm113_vm0, %v108_v6 }
  0x63   :  { %6042 = vmatpush3.bf16.msra.mxu0 %v6344_v3  ;;  %6046 = vmatpush3.bf16.msra.mxu1 %v6344_v3 }
  0x64   :  { %5707 = vmatprep.mubr.msk.f32.mxu0 %vm113_vm0, %v109_v7  ;;  %5714 = vmatprep.mubr.msk.f32.mxu1 %vm113_vm0, %v111_v9 }
  0x66   :  { %5708 = vmatmul.mubr.msk.f32.vlgmr.msra.gmra.mrb[28].mxu0 %vm113_vm0, %v110_v10  ;;  %5715 = vmatmul.mubr.msk.f32.vlgmr.msra.gmra.mrb[28].mxu1 %vm113_vm0, %v112_v11 }
  0x67   :  { %5721 = vmatprep.mubr.msk.f32.mxu0 %vm113_vm0, %v6643_v12  ;;  %5728 = vmatprep.mubr.msk.f32.mxu1 %vm113_vm0, %v6643_v12 }
 0x101   :  { %v5513_v3 = vpop.f32.mrb[0].mxu0  ;;  %v5520_v15 = vpop.f32.mrb[0].mxu1 }
 0x102   :  { %v186_v17 = vpop.f32.mrb[1].mxu0  ;;  %v267_v18 = vpop.f32.mrb[1].mxu1 }
 0x103   :  { %v6047_v22 = vpack.c.bf16 %v5513_v3, %v186_v17  ;;  %v6051_v23 = vpack.c.bf16 %v5520_v15, %v267_v18 }
 0x105   :  { %v5527_v27 = vpop.f32.mrb[2].mxu0  ;;  %v5534_v34 = vpop.f32.mrb[2].mxu1  ;;  %6048 = vmatprep.subr.bf16.mxu0 %v6047_v22  ;;  %6052 = vmatprep.subr.bf16.mxu1 %v6051_v23 }
 0x106   :  { %v348_v36 = vpop.f32.mrb[3].mxu0  ;;  %v429_v38 = vpop.f32.mrb[3].mxu1  ;;  %6050 = vmatpush3.bf16.msra.mxu0 %v6047_v22  ;;  %6054 = vmatpush3.bf16.msra.mxu1 %v6051_v23 }
 0x107   :  { %v6055_v40 = vpack.c.bf16 %v5527_v27, %v348_v36  ;;  %v6059_v42 = vpack.c.bf16 %v5534_v34, %v429_v38 }
 0x109   :  { %v5541_v43 = vpop.f32.mrb[4].mxu0  ;;  %v5548_v44 = vpop.f32.mrb[4].mxu1  ;;  %5722 = vmatmul.mubr.msk.f32.vlgmr.msra.gmra.mrb[30].mxu0 %vm113_vm0, %v6652_v39  ;;  %5729 = vmatmul.mubr.msk.f32.vlgmr.msra.gmra.mrb[30].mxu1 %vm113_vm0, %v6652_v39 }
 0x10a   :  { %6056 = vmatprep.subr.bf16.mxu0 %v6055_v40  ;;  %6060 = vmatprep.subr.bf16.mxu1 %v6059_v42  ;;  %v510_v46 = vpop.f32.mrb[5].mxu0  ;;  %v591_v47 = vpop.f32.mrb[5].mxu1 }
 0x10b   :  { %v6063_v48 = vpack.c.bf16 %v5541_v43, %v510_v46  ;;  %v6067_v52 = vpack.c.bf16 %v5548_v44, %v591_v47  ;;  %6058 = vmatpush3.bf16.msra.mxu0 %v6055_v40  ;;  %6062 = vmatpush3.bf16.msra.mxu1 %v6059_v42 }
 0x10c   :  { %5735 = vmatprep.mubr.msk.f32.mxu0 %vm113_vm0, %v6643_v12  ;;  %5742 = vmatprep.mubr.msk.f32.mxu1 %vm113_vm0, %v6643_v12 }
 0x10d   :  { %v5555_v53 = vpop.f32.mrb[6].mxu0  ;;  %v5562_v54 = vpop.f32.mrb[6].mxu1  ;;  %6064 = vmatprep.subr.bf16.mxu0 %v6063_v48  ;;  %6068 = vmatprep.subr.bf16.mxu1 %v6067_v52 }
 0x10e   :  { %5736 = vmatmul.mubr.msk.f32.vlgmr.msra.gmra.mrb[32].mxu0 %vm113_vm0, %v6652_v39  ;;  %5743 = vmatmul.mubr.msk.f32.vlgmr.msra.gmra.mrb[32].mxu1 %vm113_vm0, %v6652_v39  ;;  %v672_v55 = vpop.f32.mrb[7].mxu0  ;;  %v753_v56 = vpop.f32.mrb[7].mxu1 }
 0x10f   :  { %v6071_v57 = vpack.c.bf16 %v5555_v53, %v672_v55  ;;  %v6075_v58 = vpack.c.bf16 %v5562_v54, %v753_v56  ;;  %6066 = vmatpush3.bf16.msra.mxu0 %v6063_v48  ;;  %6070 = vmatpush3.bf16.msra.mxu1 %v6067_v52 }
 0x110   :  { %5749 = vmatprep.mubr.msk.f32.mxu0 %vm113_vm0, %v6643_v12  ;;  %5756 = vmatprep.mubr.msk.f32.mxu1 %vm113_vm0, %v6643_v12 }
 0x111   :  { %v5569_v59 = vpop.f32.mrb[8].mxu0  ;;  %v5576_v60 = vpop.f32.mrb[8].mxu1  ;;  %6072 = vmatprep.subr.bf16.mxu0 %v6071_v57  ;;  %6076 = vmatprep.subr.bf16.mxu1 %v6075_v58 }
 0x112   :  { %5750 = vmatmul.mubr.msk.f32.vlgmr.msra.gmra.mrb[34].mxu0 %vm113_vm0, %v6652_v39  ;;  %5757 = vmatmul.mubr.msk.f32.vlgmr.msra.gmra.mrb[34].mxu1 %vm113_vm0, %v6652_v39  ;;  %v834_v61 = vpop.f32.mrb[9].mxu0  ;;  %v915_v62 = vpop.f32.mrb[9].mxu1 }
 0x113   :  { %v6079_v63 = vpack.c.bf16 %v5569_v59, %v834_v61  ;;  %v6083_v0 = vpack.c.bf16 %v5576_v60, %v915_v62  ;;  %6074 = vmatpush3.bf16.msra.mxu0 %v6071_v57  ;;  %6078 = vmatpush3.bf16.msra.mxu1 %v6075_v58 }
 0x114   :  { %5763 = vmatprep.mubr.msk.f32.mxu0 %vm113_vm0, %v6643_v12  ;;  %5770 = vmatprep.mubr.msk.f32.mxu1 %vm113_vm0, %v6643_v12 }
 0x115   :  { %v5583_v1 = vpop.f32.mrb[10].mxu0  ;;  %v5590_v8 = vpop.f32.mrb[10].mxu1  ;;  %6080 = vmatprep.subr.bf16.mxu0 %v6079_v63  ;;  %6084 = vmatprep.subr.bf16.mxu1 %v6083_v0 }
 0x116   :  { %5764 = vmatmul.mubr.msk.f32.vlgmr.msra.gmra.mrb[36].mxu0 %vm113_vm0, %v6652_v39  ;;  %5771 = vmatmul.mubr.msk.f32.vlgmr.msra.gmra.mrb[36].mxu1 %vm113_vm0, %v6652_v39  ;;  %v996_v13 = vpop.f32.mrb[11].mxu0  ;;  %v1077_v14 = vpop.f32.mrb[11].mxu1 }
 0x117   :  { %v6087_v16 = vpack.c.bf16 %v5583_v1, %v996_v13  ;;  %v6091_v19 = vpack.c.bf16 %v5590_v8, %v1077_v14  ;;  %6082 = vmatpush3.bf16.msra.mxu0 %v6079_v63  ;;  %6086 = vmatpush3.bf16.msra.mxu1 %v6083_v0 }
 0x118   :  { %5777 = vmatprep.mubr.msk.f32.mxu0 %vm113_vm0, %v6643_v12  ;;  %5784 = vmatprep.mubr.msk.f32.mxu1 %vm113_vm0, %v6643_v12 }
 0x119   :  { %v5597_v20 = vpop.f32.mrb[12].mxu0  ;;  %v5604_v21 = vpop.f32.mrb[12].mxu1  ;;  %6088 = vmatprep.subr.bf16.mxu0 %v6087_v16  ;;  %6092 = vmatprep.subr.bf16.mxu1 %v6091_v19 }
 0x11a   :  { %5778 = vmatmul.mubr.msk.f32.vlgmr.msra.gmra.mrb[38].mxu0 %vm113_vm0, %v6652_v39  ;;  %5785 = vmatmul.mubr.msk.f32.vlgmr.msra.gmra.mrb[38].mxu1 %vm113_vm0, %v6652_v39  ;;  %v1158_v24 = vpop.f32.mrb[13].mxu0  ;;  %v1239_v25 = vpop.f32.mrb[13].mxu1 }
 0x11b   :  { %v6095_v29 = vpack.c.bf16 %v5597_v20, %v1158_v24  ;;  %v6099_v30 = vpack.c.bf16 %v5604_v21, %v1239_v25  ;;  %6090 = vmatpush3.bf16.msra.mxu0 %v6087_v16  ;;  %6094 = vmatpush3.bf16.msra.mxu1 %v6091_v19  ;;  %v5034_v20 = vmul.f32 %v6405_v26, %v6405_v26 }
 0x11c   :  { %5791 = vmatprep.mubr.msk.f32.mxu0 %vm113_vm0, %v6643_v12  ;;  %5798 = vmatprep.mubr.msk.f32.mxu1 %vm113_vm0, %v6643_v12  ;;  %v5035_v24 = vmul.f32 %v6438_v41, %v6438_v41  ;;  %v5036_v25 = vmul.f32 %v6447_v45, %v6447_v45 }
 0x11d   :  { %v5611_v31 = vpop.f32.mrb[14].mxu0  ;;  %v5618_v32 = vpop.f32.mrb[14].mxu1  ;;  %6096 = vmatprep.subr.bf16.mxu0 %v6095_v29  ;;  %6100 = vmatprep.subr.bf16.mxu1 %v6099_v30  ;;  %v5096_v21 = vsel %vm113_vm0, %v5034_v20, 0.0 }
 0x11e   :  { %5792 = vmatmul.mubr.msk.f32.vlgmr.msra.gmra.mrb[40].mxu0 %vm113_vm0, %v6652_v39  ;;  %5799 = vmatmul.mubr.msk.f32.vlgmr.msra.gmra.mrb[40].mxu1 %vm113_vm0, %v6652_v39  ;;  %v1320_v33 = vpop.f32.mrb[15].mxu0  ;;  %v1401_v37 = vpop.f32.mrb[15].mxu1 }
 0x11f   :  { %v6103_v2 = vpack.c.bf16 %v5611_v31, %v1320_v33  ;;  %v6107_v4 = vpack.c.bf16 %v5618_v32, %v1401_v37  ;;  %6098 = vmatpush3.bf16.msra.mxu0 %v6095_v29  ;;  %6102 = vmatpush3.bf16.msra.mxu1 %v6099_v30  ;;  %v5097_v29 = vadd.f32 %v5096_v21, %v6466_v49  ;;  %v5100_v31 = vsel %vm113_vm0, %v5036_v25, 0.0 }
 0x120   :  { %5805 = vmatprep.mubr.msk.f32.mxu0 %vm113_vm0, %v6643_v12  ;;  %5812 = vmatprep.mubr.msk.f32.mxu1 %vm113_vm0, %v6643_v12 }
 0x121   :  { %v5625_v5 = vpop.f32.mrb[16].mxu0  ;;  %v5632_v6 = vpop.f32.mrb[16].mxu1  ;;  %6104 = vmatprep.subr.bf16.mxu0 %v6103_v2  ;;  %6108 = vmatprep.subr.bf16.mxu1 %v6107_v4 }
 0x122   :  { %5806 = vmatmul.mubr.msk.f32.vlgmr.msra.gmra.mrb[42].mxu0 %vm113_vm0, %v6652_v39  ;;  %5813 = vmatmul.mubr.msk.f32.vlgmr.msra.gmra.mrb[42].mxu1 %vm113_vm0, %v6652_v39  ;;  %v1482_v7 = vpop.f32.mrb[17].mxu0  ;;  %v1563_v9 = vpop.f32.mrb[17].mxu1 }
 0x123   :  { %v6111_v10 = vpack.c.bf16 %v5625_v5, %v1482_v7  ;;  %v6115_v11 = vpack.c.bf16 %v5632_v6, %v1563_v9  ;;  %6106 = vmatpush3.bf16.msra.mxu0 %v6103_v2  ;;  %6110 = vmatpush3.bf16.msra.mxu1 %v6107_v4 }
 0x124   :  { %5819 = vmatprep.mubr.msk.f32.mxu0 %vm113_vm0, %v6643_v12  ;;  %5826 = vmatprep.mubr.msk.f32.mxu1 %vm113_vm0, %v6643_v12 }
 0x125   :  { %v5639_v3 = vpop.f32.mrb[18].mxu0  ;;  %v5646_v15 = vpop.f32.mrb[18].mxu1  ;;  %6112 = vmatprep.subr.bf16.mxu0 %v6111_v10  ;;  %6116 = vmatprep.subr.bf16.mxu1 %v6115_v11 }
 0x126   :  { %5820 = vmatmul.mubr.msk.f32.vlgmr.msra.gmra.mrb[44].mxu0 %vm113_vm0, %v6652_v39  ;;  %5827 = vmatmul.mubr.msk.f32.vlgmr.msra.gmra.mrb[44].mxu1 %vm113_vm0, %v6652_v39  ;;  %v1644_v17 = vpop.f32.mrb[19].mxu0  ;;  %v1725_v18 = vpop.f32.mrb[19].mxu1 }
 0x127   :  { %v6119_v22 = vpack.c.bf16 %v5639_v3, %v1644_v17  ;;  %v6123_v23 = vpack.c.bf16 %v5646_v15, %v1725_v18  ;;  %6114 = vmatpush3.bf16.msra.mxu0 %v6111_v10  ;;  %6118 = vmatpush3.bf16.msra.mxu1 %v6115_v11 }
 0x128   :  { %5833 = vmatprep.mubr.msk.f32.mxu0 %vm113_vm0, %v6643_v12  ;;  %5840 = vmatprep.mubr.msk.f32.mxu1 %vm113_vm0, %v6643_v12 }
 0x129   :  { %v5653_v27 = vpop.f32.mrb[20].mxu0  ;;  %v5660_v34 = vpop.f32.mrb[20].mxu1  ;;  %6120 = vmatprep.subr.bf16.mxu0 %v6119_v22  ;;  %6124 = vmatprep.subr.bf16.mxu1 %v6123_v23 }
 0x12a   :  { %5834 = vmatmul.mubr.msk.f32.vlgmr.msra.gmra.mrb[46].mxu0 %vm113_vm0, %v6652_v39  ;;  %5841 = vmatmul.mubr.msk.f32.vlgmr.msra.gmra.mrb[46].mxu1 %vm113_vm0, %v6652_v39  ;;  %v1806_v36 = vpop.f32.mrb[21].mxu0  ;;  %v1887_v38 = vpop.f32.mrb[21].mxu1 }
 0x12b   :  { %v6127_v40 = vpack.c.bf16 %v5653_v27, %v1806_v36  ;;  %v6131_v42 = vpack.c.bf16 %v5660_v34, %v1887_v38  ;;  %6122 = vmatpush3.bf16.msra.mxu0 %v6119_v22  ;;  %6126 = vmatpush3.bf16.msra.mxu1 %v6123_v23 }
 0x12c   :  { %5847 = vmatprep.mubr.msk.f32.mxu0 %vm113_vm0, %v6643_v12  ;;  %5854 = vmatprep.mubr.msk.f32.mxu1 %vm113_vm0, %v6643_v12 }
 0x12d   :  { %v5667_v43 = vpop.f32.mrb[22].mxu0  ;;  %v5674_v44 = vpop.f32.mrb[22].mxu1  ;;  %6128 = vmatprep.subr.bf16.mxu0 %v6127_v40  ;;  %6132 = vmatprep.subr.bf16.mxu1 %v6131_v42 }
 0x12e   :  { %5848 = vmatmul.mubr.msk.f32.vlgmr.msra.gmra.mrb[48].mxu0 %vm113_vm0, %v6652_v39  ;;  %5855 = vmatmul.mubr.msk.f32.vlgmr.msra.gmra.mrb[48].mxu1 %vm113_vm0, %v6652_v39  ;;  %v1968_v46 = vpop.f32.mrb[23].mxu0  ;;  %v2049_v47 = vpop.f32.mrb[23].mxu1 }
 0x12f   :  { %v6135_v48 = vpack.c.bf16 %v5667_v43, %v1968_v46  ;;  %v6139_v52 = vpack.c.bf16 %v5674_v44, %v2049_v47  ;;  %6130 = vmatpush3.bf16.msra.mxu0 %v6127_v40  ;;  %6134 = vmatpush3.bf16.msra.mxu1 %v6131_v42 }
 0x130   :  { %5861 = vmatprep.mubr.msk.f32.mxu0 %vm113_vm0, %v6643_v12  ;;  %5868 = vmatprep.mubr.msk.f32.mxu1 %vm113_vm0, %v6643_v12 }
 0x131   :  { %v5681_v53 = vpop.f32.mrb[24].mxu0  ;;  %v5688_v54 = vpop.f32.mrb[24].mxu1  ;;  %6136 = vmatprep.subr.bf16.mxu0 %v6135_v48  ;;  %6140 = vmatprep.subr.bf16.mxu1 %v6139_v52 }
 0x132   :  { %5862 = vmatmul.mubr.msk.f32.vlgmr.msra.gmra.mrb[50].mxu0 %vm113_vm0, %v6652_v39  ;;  %5869 = vmatmul.mubr.msk.f32.vlgmr.msra.gmra.mrb[50].mxu1 %vm113_vm0, %v6652_v39  ;;  %v2130_v55 = vpop.f32.mrb[25].mxu0  ;;  %v2211_v56 = vpop.f32.mrb[25].mxu1 }
 0x133   :  { %v6143_v57 = vpack.c.bf16 %v5681_v53, %v2130_v55  ;;  %v6147_v58 = vpack.c.bf16 %v5688_v54, %v2211_v56  ;;  %6138 = vmatpush3.bf16.msra.mxu0 %v6135_v48  ;;  %6142 = vmatpush3.bf16.msra.mxu1 %v6139_v52 }
 0x134   :  { %5875 = vmatprep.mubr.msk.f32.mxu0 %vm113_vm0, %v6643_v12  ;;  %5882 = vmatprep.mubr.msk.f32.mxu1 %vm113_vm0, %v6643_v12 }
 0x135   :  { %v5695_v59 = vpop.f32.mrb[26].mxu0  ;;  %v5702_v60 = vpop.f32.mrb[26].mxu1  ;;  %6144 = vmatprep.subr.bf16.mxu0 %v6143_v57  ;;  %6148 = vmatprep.subr.bf16.mxu1 %v6147_v58 }
 0x136   :  { %5876 = vmatmul.mubr.msk.f32.vlgmr.msra.gmra.mrb[52].mxu0 %vm113_vm0, %v6652_v39  ;;  %5883 = vmatmul.mubr.msk.f32.vlgmr.msra.gmra.mrb[52].mxu1 %vm113_vm0, %v6652_v39  ;;  %v2292_v61 = vpop.f32.mrb[27].mxu0  ;;  %v2373_v62 = vpop.f32.mrb[27].mxu1 }
 0x137   :  { %v6151_v63 = vpack.c.bf16 %v5695_v59, %v2292_v61  ;;  %v6155_v0 = vpack.c.bf16 %v5702_v60, %v2373_v62  ;;  %6146 = vmatpush3.bf16.msra.mxu0 %v6143_v57  ;;  %6150 = vmatpush3.bf16.msra.mxu1 %v6147_v58 }
 0x138   :  { %5889 = vmatprep.mubr.msk.f32.mxu0 %vm113_vm0, %v6643_v12  ;;  %5896 = vmatprep.mubr.msk.f32.mxu1 %vm113_vm0, %v6643_v12 }
 0x139   :  { %v5709_v1 = vpop.f32.mrb[28].mxu0  ;;  %v5716_v8 = vpop.f32.mrb[28].mxu1  ;;  %6152 = vmatprep.subr.bf16.mxu0 %v6151_v63  ;;  %6156 = vmatprep.subr.bf16.mxu1 %v6155_v0 }
 0x13a   :  { %5890 = vmatmul.mubr.msk.f32.vlgmr.msra.gmra.mrb[54].mxu0 %vm113_vm0, %v6652_v39  ;;  %5897 = vmatmul.mubr.msk.f32.vlgmr.msra.gmra.mrb[54].mxu1 %vm113_vm0, %v6652_v39  ;;  %v2454_v13 = vpop.f32.mrb[29].mxu0  ;;  %v2535_v14 = vpop.f32.mrb[29].mxu1 }
 0x13b   :  { %v6159_v16 = vpack.c.bf16 %v5709_v1, %v2454_v13  ;;  %v6163_v19 = vpack.c.bf16 %v5716_v8, %v2535_v14  ;;  %6154 = vmatpush3.bf16.msra.mxu0 %v6151_v63  ;;  %6158 = vmatpush3.bf16.msra.mxu1 %v6155_v0 }
 0x13c   :  { %5903 = vmatprep.mubr.msk.f32.mxu0 %vm113_vm0, %v6643_v12  ;;  %5910 = vmatprep.mubr.msk.f32.mxu1 %vm113_vm0, %v6643_v12 }
 0x13d   :  { %6160 = vmatprep.subr.bf16.mxu0 %v6159_v16  ;;  %6164 = vmatprep.subr.bf16.mxu1 %v6163_v19 }
 0x13e   :  { %5904 = vmatmul.mubr.msk.f32.vlgmr.msra.gmra.mrb[56].mxu0 %vm113_vm0, %v6652_v39  ;;  %5911 = vmatmul.mubr.msk.f32.vlgmr.msra.gmra.mrb[56].mxu1 %vm113_vm0, %v6652_v39 }
 0x13f   :  { %6162 = vmatpush3.bf16.msra.mxu0 %v6159_v16  ;;  %6166 = vmatpush3.bf16.msra.mxu1 %v6163_v19 }
 0x140   :  { %5917 = vmatprep.mubr.msk.f32.mxu0 %vm113_vm0, %v6643_v12  ;;  %5924 = vmatprep.mubr.msk.f32.mxu1 %vm113_vm0, %v6643_v12  ;;  %v5098_v12 = vsel %vm113_vm0, %v5035_v24, 0.0 }
 0x141   :  { %v5099_v30 = vadd.f32 %v5098_v12, %v5097_v29 }
 0x142   :  { %5918 = vmatmul.mubr.msk.f32.vlgmr.msra.gmra.mrb[58].mxu0 %vm113_vm0, %v6652_v39  ;;  %5925 = vmatmul.mubr.msk.f32.vlgmr.msra.gmra.mrb[58].mxu1 %vm113_vm0, %v6652_v39 }
 0x143   :  { %v6780_v32 = vadd.f32 %v5100_v31, %v5099_v30 }
 0x145   :  { %7116 = vst [vmem:[#allocation14_spill] sm:$0xff] %v6780_v32 }
 0x1dc   :  { %v5723_v39 = vpop.f32.mrb[30].mxu0  ;;  %v5730_v33 = vpop.f32.mrb[30].mxu1 }
 0x1dd   :  { %v2616_v26 = vpop.f32.mrb[31].mxu0  ;;  %v2691_v37 = vpop.f32.mrb[31].mxu1  ;;  %v6784_v49 = vmul.f32 %v5723_v39, %v5723_v39  ;;  %v6788_v11 = vmul.f32 %v5730_v33, %v5730_v33 }
 0x1de   :  { %v6786_v10 = vmul.f32 %v2616_v26, %v2616_v26  ;;  %v6790_v3 = vmul.f32 %v2691_v37, %v2691_v37 }
 0x1e1   :  { %v5737_v2 = vpop.f32.mrb[32].mxu0  ;;  %v5744_v4 = vpop.f32.mrb[32].mxu1 }
 0x1e2   :  { %v2766_v5 = vpop.f32.mrb[33].mxu0  ;;  %v2841_v41 = vpop.f32.mrb[33].mxu1  ;;  %v6818_v54 = vmul.f32 %v5737_v2, %v5737_v2  ;;  %v6824_v57 = vmul.f32 %v5744_v4, %v5744_v4 }
 0x1e3   :  { %v6832_v62 = vmul.f32 %v2766_v5, %v2766_v5  ;;  %v6840_v14 = vmul.f32 %v2841_v41, %v2841_v41 }
 0x1e5   :  { %v5751_v6 = vpop.f32.mrb[34].mxu0  ;;  %v5758_v7 = vpop.f32.mrb[34].mxu1 }
 0x1e6   :  { %v2916_v45 = vpop.f32.mrb[35].mxu0  ;;  %v6782_v9 = vpop.f32.mrb[35].mxu1  ;;  %v6854_v29 = vmul.f32 %v5751_v6, %v5751_v6 }
 0x1e9   :  { %v5765_v15 = vpop.f32.mrb[36].mxu0  ;;  %v5772_v17 = vpop.f32.mrb[36].mxu1 }
 0x1ea   :  { %v6792_v18 = vmul.f32 %v5765_v15, %v5765_v15  ;;  %v6794_v22 = vmul.f32 %v5765_v15, %v5723_v39  ;;  %v6796_v23 = vmul.f32 %v5772_v17, %v5772_v17  ;;  %v6798_v27 = vmul.f32 %v5772_v17, %v5730_v33  ;;  %v3066_v34 = vpop.f32.mrb[37].mxu0  ;;  %v3141_v36 = vpop.f32.mrb[37].mxu1 }
 0x1eb   :  { %v6800_v38 = vmul.f32 %v3066_v34, %v3066_v34  ;;  %v6802_v40 = vmul.f32 %v3066_v34, %v2616_v26  ;;  %v6804_v42 = vmul.f32 %v3141_v36, %v3141_v36  ;;  %v6806_v43 = vmul.f32 %v3141_v36, %v2691_v37 }
 0x1ec   :  { %7117 = vst [vmem:[#allocation15_spill] sm:$0xff] %v6798_v27  ;;  %v4933_v44 = vadd.f32 %v6792_v18, %v6784_v49  ;;  %v4935_v46 = vadd.f32 %v6796_v23, %v6788_v11  ;;  %v4873_v12 = vmul.f32 2.0, %v6794_v22  ;;  %v6863_v39 = vmul.f32 %v2916_v45, %v2916_v45 }
 0x1ed   :  { %7118 = vst [vmem:[#allocation16_spill] sm:$0xff] %v6802_v40  ;;  %7119 = vst [vmem:[#allocation17_spill] sm:$0xff] %v6806_v43  ;;  %v4932_v47 = vadd.f32 %v6800_v38, %v6786_v10  ;;  %v6816_v48 = vadd.f32 %v6804_v42, %v6790_v3  ;;  %v5779_v52 = vpop.f32.mrb[38].mxu0  ;;  %v5786_v53 = vpop.f32.mrb[38].mxu1  ;;  %v6865_v33 = vmul.f32 %v5758_v7, %v5758_v7  ;;  %v4875_v26 = vmul.f32 2.0, %v6798_v27 }
 0x1ee   :  { %v6820_v55 = vmul.f32 %v5779_v52, %v5779_v52  ;;  %v6822_v56 = vmul.f32 %v5779_v52, %v5737_v2  ;;  %v6830_v59 = vmul.f32 %v5786_v53, %v5786_v53  ;;  %v3216_v60 = vpop.f32.mrb[39].mxu0  ;;  %v3291_v61 = vpop.f32.mrb[39].mxu1  ;;  %v6834_v63 = vmul.f32 %v5786_v53, %v5744_v4 }
 0x1ef   :  { %v6836_v0 = vmul.f32 %v3216_v60, %v3216_v60  ;;  %v6838_v1 = vmul.f32 %v3216_v60, %v2766_v5  ;;  %v6846_v19 = vmul.f32 %v3291_v61, %v3291_v61  ;;  %v6848_v20 = vmul.f32 %v3291_v61, %v2841_v41 }
 0x1f0   :  { %v6828_v58 = vadd.f32 %v6820_v55, %v6818_v54  ;;  %v6844_v16 = vadd.f32 %v6830_v59, %v6824_v57  ;;  %v6872_v2 = vmul.f32 %v6782_v9, %v6782_v9  ;;  %v4872_v4 = vmul.f32 2.0, %v6802_v40 }
 0x1f1   :  { %7120 = vst [vmem:[#allocation18_spill] sm:$0xff] %v6838_v1  ;;  %v5793_v8 = vpop.f32.mrb[40].mxu0  ;;  %v5800_v13 = vpop.f32.mrb[40].mxu1  ;;  %7121 = vst [vmem:[#allocation19_spill] sm:$0xff] %v6848_v20  ;;  %v6852_v25 = vadd.f32 %v6836_v0, %v6832_v62  ;;  %v6859_v30 = vadd.f32 %v6846_v19, %v6840_v14  ;;  %v4874_v34 = vmul.f32 2.0, %v6806_v43 }
 0x1f2   :  { %v3366_v21 = vpop.f32.mrb[41].mxu0  ;;  %v3441_v24 = vpop.f32.mrb[41].mxu1  ;;  %v6861_v31 = vmul.f32 %v5793_v8, %v5793_v8  ;;  %v6868_v37 = vmul.f32 %v5793_v8, %v5751_v6  ;;  %v6879_v41 = vmul.f32 %v5800_v13, %v5800_v13  ;;  %v6886_v6 = vmul.f32 %v5800_v13, %v5758_v7 }
 0x1f3   :  { %v6888_v36 = vmul.f32 %v3366_v21, %v3366_v21  ;;  %v6890_v52 = vmul.f32 %v3366_v21, %v2916_v45  ;;  %v6896_v61 = vadd.f32 0.0001, %v4873_v12  ;;  %v6900_v32 = vmul.f32 %v3441_v24, %v3441_v24 }
 0x1f4   :  { %7122 = vst [vmem:[#allocation20_spill] sm:$0xff] %v6868_v37  ;;  %v6877_v5 = vadd.f32 %v6861_v31, %v6854_v29  ;;  %v4943_v8 = vadd.f32 %v6879_v41, %v6865_v33  ;;  %v6903_v40 = vmul.f32 %v3441_v24, %v6782_v9  ;;  %v6905_v7 = vadd.f32 0.0001, %v4933_v44 }
 0x1f5   :  { %v6881_v15 = vpop.f32.mrb[42].mxu0  ;;  %v6883_v17 = vpop.f32.mrb[42].mxu1  ;;  %7123 = vst [vmem:[#allocation21_spill] sm:$0xff] %v6896_v61  ;;  %v6907_v13 = vadd.f32 0.0001, %v4875_v26  ;;  %v4940_v45 = vadd.f32 %v6888_v36, %v6863_v39  ;;  %v6921_v27 = vadd.f32 %v6900_v32, %v6872_v2 }
 0x1f6   :  { %v6892_v53 = vpop.f32.mrb[43].mxu0  ;;  %v6894_v60 = vpop.f32.mrb[43].mxu1  ;;  %7124 = vst [vmem:[#allocation22_spill] sm:$0xff] %v6903_v40  ;;  %v6915_v12 = vadd.f32 0.0001, %v4935_v46  ;;  %v4837_v9 = vsub.f32 %v6881_v15, %v6784_v49  ;;  %v4877_v46 = vmul.f32 2.0, %v6822_v56 }
 0x1f7   :  { %7125 = vst [vmem:[#allocation23_spill] sm:$0xff] %v6907_v13  ;;  %v6917_v61 = vadd.f32 0.0001, %v4872_v4  ;;  %v6929_v26 = vadd.f32 0.0001, %v4932_v47  ;;  %v4839_v4 = vsub.f32 %v6883_v17, %v6788_v11  ;;  %v4876_v13 = vmul.f32 2.0, %v6838_v1 }
 0x1f8   :  { %v6931_v40 = vadd.f32 0.0001, %v4874_v34  ;;  %v4836_v49 = vsub.f32 %v6892_v53, %v6786_v10  ;;  %v4838_v15 = vsub.f32 %v6894_v60, %v6790_v3  ;;  %v4946_v10 = vadd.f32 0.0001, %v6816_v48 }
 0x1f9   :  { %v6911_v21 = vpop.f32.mrb[44].mxu0  ;;  %v6913_v43 = vpop.f32.mrb[44].mxu1  ;;  %7126 = vst [vmem:[#allocation24_spill] sm:$0xff] %v6917_v61  ;;  %v4879_v61 = vmul.f32 2.0, %v6834_v63  ;;  %v4878_v3 = vmul.f32 2.0, %v6848_v20  ;;  %v4881_v53 = vmul.f32 2.0, %v6868_v37  ;;  %v6982_v37 = vsub.f32 %v6423_v35, %v6484_v51 }
 0x1fa   :  { %v6925_v44 = vpop.f32.mrb[45].mxu0  ;;  %v6927_v24 = vpop.f32.mrb[45].mxu1  ;;  %7127 = vst [vmem:[#allocation25_spill] sm:$0xff] %v6931_v40  ;;  %v4841_v47 = vsub.f32 %v6911_v21, %v6818_v54  ;;  %v4843_v34 = vsub.f32 %v6913_v43, %v6824_v57  ;;  %v6972_v21 = vadd.f32 0.0001, %v4877_v46  ;;  %v6986_v48 = vsub.f32 %v6411_v28, %v6476_v50 }
 0x1fb   :  { %v4840_v40 = vsub.f32 %v6925_v44, %v6832_v62  ;;  %v4842_v11 = vsub.f32 %v6927_v24, %v6840_v14  ;;  %v6965_v14 = vadd.f32 0.0001, %v6828_v58  ;;  %v6974_v44 = vadd.f32 0.0001, %v4879_v61  ;;  %7130 = vst [vmem:[#allocation28_spill] sm:$0xff] %v6982_v37 }
 0x1fc   :  { %v4951_v24 = vadd.f32 0.0001, %v6844_v16  ;;  %v6977_v43 = vadd.f32 0.0001, %v4876_v13  ;;  %v4948_v54 = vadd.f32 0.0001, %v6852_v25 }
 0x1fd   :  { %v6950_v17 = vpop.f32.mrb[46].mxu0  ;;  %v6952_v1 = vpop.f32.mrb[46].mxu1  ;;  %7128 = vst [vmem:[#allocation26_spill] sm:$0xff] %v6974_v44  ;;  %7131 = vst [vmem:[#allocation29_spill] sm:$0xff] %v6986_v48  ;;  %v6988_v46 = vadd.f32 0.0001, %v4878_v3 }
 0x1fe   :  { %v6960_v57 = vpop.f32.mrb[47].mxu0  ;;  %v6962_v62 = vpop.f32.mrb[47].mxu1  ;;  %7129 = vst [vmem:[#allocation27_spill] sm:$0xff] %v6977_v43  ;;  %v4950_v61 = vadd.f32 0.0001, %v6859_v30  ;;  %v7001_v50 = vmul.f32 2.0, %v6886_v6 }
 0x1ff   :  { %v6993_v43 = vadd.f32 0.0001, %v4881_v53  ;;  %v6996_v44 = vadd.f32 0.0001, %v6877_v5  ;;  %v7004_v51 = vmul.f32 2.0, %v6890_v52 }
 0x200   :  { %7133 = vst [vmem:[#allocation31_spill] sm:$0xff] %v7001_v50 }
 0x201   :  { %v5849_v58 = vpop.f32.mrb[48].mxu0  ;;  %v5856_v20 = vpop.f32.mrb[48].mxu1  ;;  %7132 = vst [vmem:[#allocation30_spill] sm:$0xff] %v6993_v43 }
 0x202   :  { %v4849_v16 = vsub.f32 %v5849_v58, %v6792_v18  ;;  %v4851_v13 = vsub.f32 %v5856_v20, %v6796_v23  ;;  %v3966_v60 = vpop.f32.mrb[49].mxu0  ;;  %v4041_v25 = vpop.f32.mrb[49].mxu1  ;;  %v4955_v23 = vadd.f32 0.0001, %v4943_v8  ;;  %v7006_v20 = vadd.f32 0.0001, %v4940_v45 }
 0x203   :  { %v4848_v35 = vsub.f32 %v3966_v60, %v6800_v38  ;;  %v4850_v28 = vsub.f32 %v4041_v25, %v6804_v42 }
 0x204   :  { %v4957_v18 = vadd.f32 %v4849_v16, %v4837_v9  ;;  %v4959_v30 = vadd.f32 %v4851_v13, %v4839_v4 }
 0x205   :  { %v4956_v3 = vadd.f32 %v4848_v35, %v4836_v49  ;;  %v4958_v53 = vadd.f32 %v4850_v28, %v4838_v15  ;;  %v5863_v58 = vpop.f32.mrb[50].mxu0  ;;  %v5870_v5 = vpop.f32.mrb[50].mxu1 }
 0x206   :  { %v4969_v48 = vadd.f32 0.0009, %v4957_v18  ;;  %v4971_v37 = vadd.f32 0.0009, %v4959_v30  ;;  %v4853_v38 = vsub.f32 %v5863_v58, %v6820_v55  ;;  %v4855_v42 = vsub.f32 %v5870_v5, %v6830_v59  ;;  %v4116_v60 = vpop.f32.mrb[51].mxu0  ;;  %v4191_v25 = vpop.f32.mrb[51].mxu1 }
 0x207   :  { %v4968_v43 = vadd.f32 0.0009, %v4956_v3  ;;  %v4970_v50 = vadd.f32 0.0009, %v4958_v53  ;;  %v4852_v9 = vsub.f32 %v4116_v60, %v6836_v0  ;;  %v4854_v8 = vsub.f32 %v4191_v25, %v6846_v19 }
 0x208   :  { %v4981_v45 = vmul.f32 %v4969_v48, %v6905_v7  ;;  %v4983_v4 = vmul.f32 %v4971_v37, %v6915_v12  ;;  %v4961_v49 = vadd.f32 %v4853_v38, %v4841_v47  ;;  %v4963_v15 = vadd.f32 %v4855_v42, %v4843_v34 }
 0x209   :  { %v4980_v16 = vmul.f32 %v4968_v43, %v6929_v26  ;;  %v4982_v13 = vmul.f32 %v4970_v50, %v4946_v10  ;;  %v4960_v55 = vadd.f32 %v4852_v9, %v4840_v40  ;;  %v4962_v35 = vadd.f32 %v4854_v8, %v4842_v11  ;;  %v5877_v59 = vpop.f32.mrb[52].mxu0  ;;  %v5884_v28 = vpop.f32.mrb[52].mxu1 }
 0x20a   :  { %6178 = vrcp.f32 %v4981_v45  ;;  %v4973_v18 = vadd.f32 0.0009, %v4961_v49  ;;  %v4975_v30 = vadd.f32 0.0009, %v4963_v15  ;;  %v4857_v0 = vsub.f32 %v5877_v59, %v6861_v31  ;;  %v4266_v3 = vpop.f32.mrb[53].mxu0  ;;  %v4341_v19 = vpop.f32.mrb[53].mxu1 }
 0x20b   :  { %6180 = vrcp.f32 %v4983_v4  ;;  %v4972_v7 = vadd.f32 0.0009, %v4960_v55  ;;  %v4974_v48 = vadd.f32 0.0009, %v4962_v35  ;;  %v4859_v37 = vsub.f32 %v5884_v28, %v6879_v41  ;;  %v7139_v45 = vld [vmem:[#allocation16_spill] sm:$0xff]  ;;  %v7140_v15 = vld [vmem:[#allocation17_spill] sm:$0xff] }
 0x20c   :  { %v4954_v12 = vadd.f32 0.0001, %v6921_v27  ;;  %v4985_v26 = vmul.f32 %v4973_v18, %v6965_v14  ;;  %v4987_v40 = vmul.f32 %v4975_v30, %v4951_v24  ;;  %v7134_v47 = vsub.f32 %v6950_v17, %v6854_v29  ;;  %v7141_v59 = vld [vmem:[#allocation21_spill] sm:$0xff]  ;;  %v7142_v18 = vld [vmem:[#allocation23_spill] sm:$0xff] }
 0x20d   :  { %6182 = vrcp.f32 %v4980_v16  ;;  %v4984_v11 = vmul.f32 %v4972_v7, %v4948_v54  ;;  %v4986_v10 = vmul.f32 %v4974_v48, %v4950_v61  ;;  %v7135_v31 = vsub.f32 %v6952_v1, %v6865_v33  ;;  %v5891_v50 = vpop.f32.mrb[54].mxu0  ;;  %v5898_v53 = vpop.f32.mrb[54].mxu1  ;;  %v7136_v54 = vld [vmem:[#allocation15_spill] sm:$0xff] }
 0x20e   :  { %v4965_v34 = vadd.f32 %v4857_v0, %v7134_v47  ;;  %6184 = vrcp.f32 %v4982_v13  ;;  %v4856_v27 = vsub.f32 %v4266_v3, %v6888_v36  ;;  %v4858_v14 = vsub.f32 %v4341_v19, %v6900_v32  ;;  %v4416_v24 = vpop.f32.mrb[55].mxu0  ;;  %v4491_v58 = vpop.f32.mrb[55].mxu1 }
 0x20f   :  { %v4967_v43 = vadd.f32 %v4859_v37, %v7135_v31  ;;  %6186 = vrcp.f32 %v4985_v26  ;;  %v4861_v17 = vsub.f32 %v5891_v50, %v6794_v22  ;;  %v4863_v61 = vsub.f32 %v5898_v53, %v7136_v54  ;;  %v7143_v26 = vld [vmem:[#allocation18_spill] sm:$0xff]  ;;  %v7144_v31 = vld [vmem:[#allocation24_spill] sm:$0xff] }
 0x210   :  { %v4977_v41 = vadd.f32 0.0009, %v4965_v34  ;;  %6188 = vrcp.f32 %v4987_v40  ;;  %v7137_v33 = vsub.f32 %v6960_v57, %v6863_v39  ;;  %v7138_v36 = vsub.f32 %v6962_v62, %v6872_v2 }
 0x211   :  { %v4979_v29 = vadd.f32 0.0009, %v4967_v43  ;;  %6190 = vrcp.f32 %v4984_v11  ;;  %v4897_v42 = vmul.f32 2.0, %v4861_v17  ;;  %v4899_v60 = vmul.f32 2.0, %v4863_v61  ;;  %v5905_v25 = vpop.f32.mrb[56].mxu0  ;;  %v5912_v9 = vpop.f32.mrb[56].mxu1 }
 0x212   :  { %v4989_v1 = vmul.f32 %v4977_v41, %v6996_v44  ;;  %v4964_v5 = vadd.f32 %v4856_v27, %v7137_v33  ;;  %v4966_v38 = vadd.f32 %v4858_v14, %v7138_v36  ;;  %6192 = vrcp.f32 %v4986_v10  ;;  %v4566_v44 = vpop.f32.mrb[57].mxu0  ;;  %v4641_v49 = vpop.f32.mrb[57].mxu1  ;;  %v7145_v14 = vld [vmem:[#allocation25_spill] sm:$0xff] }
 0x213   :  { %v4991_v32 = vmul.f32 %v4979_v29, %v4955_v23  ;;  %v4860_v4 = vsub.f32 %v4416_v24, %v7139_v45  ;;  %v4909_v39 = vadd.f32 0.0009, %v4897_v42  ;;  %v4911_v57 = vadd.f32 0.0009, %v4899_v60 }
 0x214   :  { %v4976_v22 = vadd.f32 0.0009, %v4964_v5  ;;  %v4978_v8 = vadd.f32 0.0009, %v4966_v38  ;;  %6194 = vrcp.f32 %v4989_v1  ;;  %v4862_v16 = vsub.f32 %v4491_v58, %v7140_v15  ;;  %v6179_v2 = vpop.eup %6178  ;;  %v7146_v58 = vld [vmem:[#allocation19_spill] sm:$0xff] }
 0x215   :  { %v4896_v13 = vmul.f32 2.0, %v4860_v4  ;;  %v4865_v55 = vsub.f32 %v5905_v25, %v6822_v56  ;;  %v6181_v35 = vpop.eup %6180  ;;  %v4921_v28 = vmul.f32 %v4909_v39, %v7141_v59  ;;  %v4923_v30 = vmul.f32 %v4911_v57, %v7142_v18  ;;  %v5919_v19 = vpop.f32.mrb[58].mxu0  ;;  %v7149_v4 = vld [vmem:[#allocation27_spill] sm:$0xff]  ;;  %v7150_v39 = vld [vmem:[#allocation22_spill] sm:$0xff] }
 0x216   :  { %v4988_v62 = vmul.f32 %v4976_v22, %v7006_v20  ;;  %v4990_v23 = vmul.f32 %v4978_v8, %v4954_v12  ;;  %v4898_v0 = vmul.f32 2.0, %v4862_v16  ;;  %v4867_v3 = vsub.f32 %v5912_v9, %v6834_v63  ;;  %v5926_v7 = vpop.f32.mrb[58].mxu1  ;;  %v4716_v20 = vpop.f32.mrb[59].mxu0  ;;  %v7148_v8 = vld [vmem:[#allocation26_spill] sm:$0xff]  ;;  %v7151_v18 = vld [vmem:[#allocation31_spill] sm:$0xff] }
 0x217   :  { %6196 = vrcp.f32 %v4991_v32  ;;  %v4908_v48 = vadd.f32 0.0009, %v4896_v13  ;;  %v4901_v37 = vmul.f32 2.0, %v4865_v55  ;;  %v4864_v40 = vsub.f32 %v4566_v44, %v7143_v26  ;;  %v4791_v12 = vpop.f32.mrb[59].mxu1  ;;  %v6183_v47 = vpop.eup %6182  ;;  %v7147_v32 = vld [vmem:[#allocation20_spill] sm:$0xff]  ;;  %v7152_v26 = vld [vmem:[#allocation30_spill] sm:$0xff] }
 0x218   :  { %6198 = vrcp.f32 %v4988_v62  ;;  %v4995_v56 = vmul.f32 %v6179_v2, %v4921_v28  ;;  %v4999_v34 = vmul.f32 %v6181_v35, %v4923_v30  ;;  %v4910_v11 = vadd.f32 0.0009, %v4898_v0  ;;  %v6185_v10 = vpop.eup %6184 }
 0x219   :  { %v4920_v43 = vmul.f32 %v4908_v48, %v7144_v31  ;;  %v4913_v50 = vadd.f32 0.0009, %v4901_v37  ;;  %v4903_v53 = vmul.f32 2.0, %v4867_v3  ;;  %v4900_v63 = vmul.f32 2.0, %v4864_v40  ;;  %v6187_v41 = vpop.eup %6186 }
 0x21a   :  { %6200 = vrcp.f32 %v4990_v23  ;;  %v5050_v27 = vsel %vm113_vm0, %v4995_v56, 0.0  ;;  %v4922_v24 = vmul.f32 %v4910_v11, %v7145_v14  ;;  %v4866_v29 = vsub.f32 %v4641_v49, %v7146_v58  ;;  %v6189_v17 = vpop.eup %6188 }
 0x21b   :  { %v4993_v54 = vmul.f32 %v6183_v47, %v4920_v43  ;;  %v4925_v61 = vmul.f32 %v4913_v50, %v6972_v21  ;;  %v4915_v1 = vadd.f32 0.0009, %v4903_v53  ;;  %v4912_v33 = vadd.f32 0.0009, %v4900_v63  ;;  %v6191_v5 = vpop.eup %6190 }
 0x21c   :  { %v4997_v36 = vmul.f32 %v6185_v10, %v4922_v24  ;;  %v4902_v38 = vmul.f32 2.0, %v4866_v29  ;;  %v4869_v42 = vsub.f32 %v5919_v19, %v7147_v32  ;;  %v4871_v60 = vsub.f32 %v5926_v7, %v6886_v6  ;;  %v6193_v25 = vpop.eup %6192  ;;  %v7153_v10 = vld [vmem:[#allocation28_spill] sm:$0xff] }
 0x21d   :  { %v5049_v9 = vsel %vm113_vm0, %v4993_v54, 0.0  ;;  %v5003_v22 = vmul.f32 %v6187_v41, %v4925_v61  ;;  %v4927_v45 = vmul.f32 %v4915_v1, %v7148_v8  ;;  %v4924_v44 = vmul.f32 %v4912_v33, %v7149_v4  ;;  %v6202_v54 = vld [vmem:[#allocation2 + $0x58] sm:$0xff] }
 0x21e   :  { %v6195_v49 = vpop.eup %6194  ;;  %v4882_v21 = vmul.f32 2.0, %v7150_v39  ;;  %v5051_v57 = vadd.f32 %v5050_v27, %v5049_v9  ;;  %v4914_v15 = vadd.f32 0.0009, %v4902_v38  ;;  %v4905_v16 = vmul.f32 2.0, %v4869_v42  ;;  %v6203_v61 = vld [vmem:[#allocation5 + $0x58] sm:$0xff] }
 0x21f   :  { %v5052_v2 = vsel %vm113_vm0, %v4997_v36, 0.0  ;;  %v5007_v62 = vmul.f32 %v6189_v17, %v4927_v45  ;;  %v5001_v23 = vmul.f32 %v6191_v5, %v4924_v44  ;;  %v4907_v13 = vmul.f32 2.0, %v4871_v60  ;;  %v7154_v5 = vld [vmem:[#allocation29_spill] sm:$0xff] }
 0x220   :  { %v5053_v6 = vadd.f32 %v5052_v2, %v5051_v57  ;;  %v4926_v55 = vmul.f32 %v4914_v15, %v6988_v46  ;;  %v4917_v35 = vadd.f32 0.0009, %v4905_v16  ;;  %v4868_v59 = vsub.f32 %v4716_v20, %v6890_v52 }
 0x221   :  { %v6197_v28 = vpop.eup %6196  ;;  %v4895_v30 = vadd.f32 0.0001, %v7151_v18  ;;  %v5054_v0 = vsel %vm113_vm0, %v4999_v34, 0.0  ;;  %v4919_v3 = vadd.f32 0.0009, %v4907_v13  ;;  %v4870_v19 = vsub.f32 %v4791_v12, %v7150_v39 }
 0x222   :  { %v6199_v7 = vpop.eup %6198  ;;  %v5055_v48 = vadd.f32 %v5054_v0, %v5053_v6  ;;  %v5005_v37 = vmul.f32 %v6193_v25, %v4926_v55  ;;  %v4929_v40 = vmul.f32 %v4917_v35, %v7152_v26  ;;  %v4904_v47 = vmul.f32 2.0, %v4868_v59  ;;  %v7155_v25 = vld [vmem:[#allocation14_spill] sm:$0xff] }
 0x223   :  { %v5056_v56 = vsel %vm113_vm0, %v5001_v23, 0.0  ;;  %v4931_v46 = vmul.f32 %v4919_v3, %v4895_v30  ;;  %v4906_v11 = vmul.f32 2.0, %v4870_v19  ;;  %v5037_v52 = vmul.f32 %v7153_v10, %v7153_v10 }
 0x224   :  { %v6201_v20 = vpop.eup %6200  ;;  %v4892_v31 = vadd.f32 0.0001, %v7004_v51  ;;  %v5057_v34 = vadd.f32 %v5056_v56, %v5055_v48  ;;  %v5011_v43 = vmul.f32 %v6195_v49, %v4929_v40  ;;  %v4916_v50 = vadd.f32 0.0009, %v4904_v47 }
 0x225   :  { %v4894_v12 = vadd.f32 0.0001, %v4882_v21  ;;  %v5058_v53 = vsel %vm113_vm0, %v5003_v22, 0.0  ;;  %v4918_v63 = vadd.f32 0.0009, %v4906_v11  ;;  %v5015_v41 = vmul.f32 %v6197_v28, %v4931_v46 }
 0x226   :  { %v5059_v27 = vadd.f32 %v5058_v53, %v5057_v34  ;;  %v4928_v14 = vmul.f32 %v4916_v50, %v4892_v31  ;;  %v5060_v24 = vsel %vm113_vm0, %v5005_v37, 0.0  ;;  %v5027_v1 = vsub.f32 %v6202_v54, %v6203_v61 }
 0x227   :  { %v4930_v58 = vmul.f32 %v4918_v63, %v4894_v12  ;;  %v5062_v51 = vsel %vm113_vm0, %v5007_v62, 0.0  ;;  %v5038_v36 = vmul.f32 %v7154_v5, %v7154_v5  ;;  %v5102_v38 = vsel %vm113_vm0, %v5037_v52, 0.0 }
 0x228   :  { %v5061_v29 = vadd.f32 %v5060_v24, %v5059_v27  ;;  %v5009_v17 = vmul.f32 %v6199_v7, %v4928_v14  ;;  %v5103_v9 = vadd.f32 %v5102_v38, %v7155_v25  ;;  %v5066_v22 = vsel %vm113_vm0, %v5011_v43, 0.0 }
 0x229   :  { %v5013_v33 = vmul.f32 %v6201_v20, %v4930_v58  ;;  %v5039_v8 = vmul.f32 %v5027_v1, %v5027_v1  ;;  %v5104_v45 = vsel %vm113_vm0, %v5038_v36, 0.0  ;;  %v5070_v21 = vsel %vm113_vm0, %v5015_v41, 0.0 }
 0x22a   :  { %v5063_v32 = vadd.f32 %v5062_v51, %v5061_v29  ;;  %v5064_v42 = vsel %vm113_vm0, %v5009_v17, 0.0  ;;  %v5105_v39 = vadd.f32 %v5104_v45, %v5103_v9 }
 0x22b   :  { %v5068_v44 = vsel %vm113_vm0, %v5013_v33, 0.0  ;;  %v5106_v57 = vsel %vm113_vm0, %v5039_v8, 0.0 }
 0x22c   :  { %v5065_v60 = vadd.f32 %v5064_v42, %v5063_v32  ;;  %v5107_v16 = vadd.f32 %v5106_v57, %v5105_v39 }
 0x22e   :  { %v5067_v4 = vadd.f32 %v5066_v22, %v5065_v60 }
 0x230   :  { %v5069_v49 = vadd.f32 %v5068_v44, %v5067_v4 }
 0x232   :  { %v5071_v15 = vadd.f32 %v5070_v21, %v5069_v49 }
 0x234   :  { %5072 = vadd.xlane.f32.xlu0 %v5071_v15 }
 0x238   :  { %5108 = vadd.xlane.f32.xlu0 %v5107_v16 }
 0x2c1   :  { %v5073_v2 = vpop.xlane.xlu0 %5072 }
 0x2c2   :  { %v5074_v62 = vrot.slane %v5073_v2, 4 }
 0x2c4   :  { %v5075_v23 = vadd.f32 %v5074_v62, %v5073_v2 }
 0x2c5   :  { %v5109_v13 = vpop.xlane.xlu0 %5108 }
 0x2c6   :  { %v5076_v6 = vrot.slane %v5075_v23, 2  ;;  %v5110_v55 = vrot.slane %v5109_v13, 4 }
 0x2c8   :  { %v5111_v35 = vadd.f32 %v5110_v55, %v5109_v13  ;;  %v5077_v59 = vadd.f32 %v5076_v6, %v5075_v23 }
 0x2ca   :  { %v5112_v28 = vrot.slane %v5111_v35, 2  ;;  %v5078_v18 = vrot.slane %v5077_v59, 1 }
 0x2cc   :  { %v5113_v30 = vadd.f32 %v5112_v28, %v5111_v35  ;;  %v5079_v0 = vadd.f32 %v5078_v18, %v5077_v59 }
 0x2ce   :  { %6167 = vpush %v5079_v0  ;;  %v5114_v3 = vrot.slane %v5113_v30, 1 }
 0x2d0   :  { %v5115_v19 = vadd.f32 %v5114_v3, %v5113_v30 }
 0x2d2   :  { %6169 = vpush %v5115_v19 }
 0x2ff   :  { %s6168_s3 = spop %6167 }
 0x300   :  { %5083 = sst [smem:[#allocation7]] %s6168_s3 }
 0x303   :  { %s6170_s24 = spop %6169 }
 0x304   :  { %6257 = shalt.err (!%p6254_p4)
}
 0x305   :  { %s6280_s7 = smov [#allocation7]   ;;  %5119 = sst [smem:[#allocation8]] %s6170_s24 }
 0x306   :  { %5127 = dma.smem_to_hbm %s6280_s7, 16, %s7107_s4, [#allocation4]  }
 0x307   :  { %s6258_s12 = scalar_lea.hbm %s7108_s5, 16 }
 0x308   :  { %p6259_p5 = scmp.ne.s32.totalorder %s7108_s5, %s6258_s12  ;;  %p6262_p6 = scmp.lt.u32.totalorder %s6258_s12, %s7108_s5 }
 0x30a   :  { %p6264_p7 = pnand %p6262_p6, %p6259_p5 }
 0x30c   :  { %6267 = shalt.err (!%p6264_p7)
}
 0x30d   :  { %s6281_s0 = smov [#allocation8]  }
 0x30e   :  { %5135 = dma.smem_to_hbm %s6281_s0, 16, %s7108_s5, [#allocation9]  }
 0x30f   :  { %6272 = dma.done.wait [#allocation4], 16  }
 0x310   :  { %6273 = vsyncadd [#allocation4], 4294967280 }
 0x311   :  { %6274 = dma.done.wait [#allocation9], 16  }
 0x312   :  { %6275 = vsyncadd [#allocation9], 4294967280 }
 0x313   :  { %5142 = sfence }
 0x314   :  { %5143 = vsyncpa [#allocation3], 1 }
 0x315   :  { %5144 = vsyncpa [#allocation6], 1 }
 0x316   :  { %5145 = vsyncpa [#allocation4], 1 }
 0x317   :  { %5146 = vsyncpa [#allocation9], 1 }

</bundles_post_ra>
